<compile_context>
chip_gen: v5e
topology: v5e:2x2
jax: 0.10.0
libtpu: 0.0.40
codegen_flags: <defaults>
</compile_context>

<pallas_src>
import functools

import jax
import jax.numpy as jnp
from jax.experimental import pallas as pl
from jax.experimental.pallas import tpu as pltpu

NUM_GROUPS = 32
EPS = 1e-6


# ----------------------------- kernel helpers ------------------------------ #

def _group_norm(h, p_bf, gamma, beta, inv_n):
    """GroupNorm over a (Bb, L, C) f32 tile, two-pass (centered) variance.

    p_bf : (C, C) 0/1 bf16 group co-membership matrix (P = m @ m.T); a single
           matmul against it both reduces within the group and broadcasts the
           group statistic back to every channel of that group.
    gamma, beta : (1, C) f32.   inv_n = 1 / (L * group_size).
    """
    s = jnp.sum(h, axis=1)                                              # (Bb, C)
    mean_c = jnp.dot(s.astype(p_bf.dtype), p_bf,
                     preferred_element_type=jnp.float32) * inv_n        # (Bb, C)
    d = h - mean_c[:, None, :]                                          # (Bb, L, C)
    sq = jnp.sum(d * d, axis=1)                                         # (Bb, C)
    var_c = jnp.dot(sq.astype(p_bf.dtype), p_bf,
                    preferred_element_type=jnp.float32) * inv_n
    scale = jax.lax.rsqrt(var_c + EPS)[:, None, :] * gamma              # (Bb, 1, C)
    return d * scale + beta


def _silu_cast(h, cdt, silu_bf16):
    """SiLU; returns the MXU operand dtype.  bf16 compute on v6e/v7x only."""
    if silu_bf16:
        hb = h.astype(cdt)
        return hb * jax.nn.sigmoid(hb)
    return (h * jax.nn.sigmoid(h)).astype(cdt)


def _conv3(h_bf, w_fused):
    """Conv1d(k=3, s=1, p=1), no bias, on a (Bb, L, Cin) bf16 tile.

    Builds [x[l-1] | x[l] | x[l+1]] as a (Bb*L, 3*Cin) bf16 matrix (taps and
    concat in bf16 to halve copy traffic) and does ONE MXU matmul against
    w_fused (3*Cin, Cout) with f32 accumulation.  Zero padding at the borders;
    shifts are per-batch (axis=1) so nothing leaks across batch elements.
    """
    Bb, L, C = h_bf.shape
    cout = w_fused.shape[-1]
    z = jnp.zeros((Bb, 1, C), dtype=h_bf.dtype)
    h_m1 = jnp.concatenate([z, h_bf[:, : L - 1, :]], axis=1)            # x[l-1]
    h_p1 = jnp.concatenate([h_bf[:, 1:, :], z], axis=1)                 # x[l+1]
    hcat = jnp.concatenate([h_m1, h_bf, h_p1], axis=2)                  # (Bb, L, 3C)
    out = jnp.dot(hcat.reshape(Bb * L, 3 * C), w_fused,
                  preferred_element_type=jnp.float32)
    # TODO(synk): scratch-based (Bb, L+2, C) padded tap construction to avoid
    # the shifted-copy concats entirely.
    return out.reshape(Bb, L, cout)


# --------------------------------- kernel ---------------------------------- #

def _resnet_block_kernel(
    x_ref,                    # (Bb, L, Cin)  bf16
    t_ref,                    # (Bb, 1, Cout) f32   silu(temb)@W^T + b_temb + b_conv1
    g1_ref, b1_ref,           # (1, Cin) f32
    p1_ref,                   # (Cin, Cin)  bf16 group co-membership
    w1_ref,                   # (3*Cin, Cout) bf16
    g2_ref, b2_ref,           # (1, Cout) f32
    p2_ref,                   # (Cout, Cout) bf16
    w2_ref, cb2_ref,          # (3*Cout, Cout) bf16, (1, Cout) f32 (conv2 [+ nin] bias)
    *rest,                    # [wn_ref (Cin, Cout) bf16,] out_ref
    has_shortcut, silu_bf16, inv_n1, inv_n2,
):
    if has_shortcut:
        wn_ref, out_ref = rest
    else:
        (out_ref,) = rest

    cdt = w1_ref.dtype
    Bb, L, cin = x_ref.shape

    # norm1 -> silu -> conv1 (single fused MXU matmul); x(f32) dies after norm1.
    h = _group_norm(x_ref[...].astype(jnp.float32),
                    p1_ref[...], g1_ref[...], b1_ref[...], inv_n1)
    h = _silu_cast(h, cdt, silu_bf16)
    h = _conv3(h, w1_ref[...])                       # (Bb, L, Cout) f32, no bias
    h = h + t_ref[...]                               # temb proj + conv1 bias folded

    # norm2 -> silu -> dropout(identity at inference) -> conv2
    h = _group_norm(h, p2_ref[...], g2_ref[...], b2_ref[...], inv_n2)
    h = _silu_cast(h, cdt, silu_bf16)
    h = _conv3(h, w2_ref[...]) + cb2_ref[...]        # conv2 (+ nin) bias folded

    # shortcut + residual (x re-read from the bf16 ref; no f32 copy held live)
    if has_shortcut:
        cout = h.shape[-1]
        xs = jnp.dot(x_ref[...].reshape(Bb * L, cin), wn_ref[...],
                     preferred_element_type=jnp.float32).reshape(Bb, L, cout)
        out_ref[...] = (xs + h).astype(out_ref.dtype)
    else:
        out_ref[...] = (x_ref[...].astype(jnp.float32) + h).astype(out_ref.dtype)


# -------------------------------- wrappers ---------------------------------- #

def _chip_info():
    """(vmem_capacity_bytes, multi_tensorcore, is_v5) with safe fallbacks."""
    kind = ""
    try:
        kind = jax.devices()[0].device_kind.lower()
    except Exception:
        pass
    multi_tc = ("v7" in kind) or ("7x" in kind)       # v7x: 2 TCs/chip
    is_v5 = "v5" in kind
    vmem = None
    try:
        vmem = int(getattr(pltpu.get_tpu_info(), "vmem_capacity_bytes"))
    except Exception:
        vmem = None
    if not vmem or vmem <= 0:
        vmem = (64 << 20) if multi_tc else (128 << 20)
    return vmem, multi_tc, is_v5


def _group_comembership(c):
    """(C, C) 0/1 matrix: 1 iff channels i, j are in the same GroupNorm group."""
    gs = c // NUM_GROUPS
    g = jnp.arange(c) // gs
    return (g[:, None] == g[None, :]).astype(jnp.float32)


def _fuse_conv_weight(w):
    """torch (Cout, Cin, 3) -> (3*Cin, Cout); row = k*Cin + ci (k=0 is x[l-1])."""
    cout, cin, _ = w.shape
    return jnp.transpose(w, (2, 1, 0)).reshape(3 * cin, cout)


def _pick_block_b(B, L, cin, cout, *, weight_bytes, vmem_limit, multi_tc, mxu_m):
    """Largest batch-block fitting the VMEM budget; MXU-M aligned when possible.

    per_b deliberately over-counts: double-buffered bf16 x/out blocks, f32
    GroupNorm temporaries, bf16 conv-tap copies and f32 conv outputs.
    The >=2-grid-step clamp only applies on multi-TC chips (v7x).
    """
    per_b = L * (24 * cin + 40 * cout)
    act_budget = vmem_limit - 2 * weight_bytes - (4 << 20)
    bb_cap = max(1, min(B, act_budget // per_b if per_b > 0 else B))
    if multi_tc and B >= 2:
        bb_cap = min(bb_cap, max(1, B // 2))
    divisors = [d for d in range(1, B + 1) if B % d == 0 and d <= bb_cap]
    aligned = [d for d in divisors if (d * L) % mxu_m == 0]
    return max(aligned) if aligned else max(divisors)
    # TODO(synk): add an L-tiled two-pass path (stats kernel, then apply+conv
    # with a 1-element halo) for long sequences that exceed the per-TC VMEM.


def resnet_block_1d_nlc(x_nlc, temb, params, *, block_b=None,
                        out_dtype=jnp.bfloat16):
    """Core (transpose-free) entry point.

    x_nlc: (B, L, Cin) float, temb: (B, T).  Returns (B, L, Cout) in out_dtype.
    """
    B, L, cin = x_nlc.shape
    cout = params["conv1_w"].shape[0]
    assert cin % NUM_GROUPS == 0 and cout % NUM_GROUPS == 0
    has_shortcut = cin != cout

    vmem_bytes, multi_tc, is_v5 = _chip_info()
    vmem_limit = int(vmem_bytes * 3 // 4)             # leave scoped-VMEM headroom
    cdt = jnp.bfloat16                                # MXU operand dtype

    x_bf = x_nlc.astype(cdt)                          # (B, L, Cin)

    # Hoisted temb projection: silu(temb) @ W^T + b_temb (+ conv1 bias folded),
    # one XLA matmul for all B; kernel only does the broadcast add.
    t = temb.astype(jnp.float32)
    t = t * jax.nn.sigmoid(t)
    tproj = (t @ params["temb_w"].T.astype(jnp.float32)
             + params["temb_b"].astype(jnp.float32)
             + params["conv1_b"].astype(jnp.float32))[:, None, :]       # (B,1,Cout)

    g1 = params["g1"].astype(jnp.float32).reshape(1, cin)
    b1 = params["b1"].astype(jnp.float32).reshape(1, cin)
    g2 = params["g2"].astype(jnp.float32).reshape(1, cout)
    b2 = params["b2"].astype(jnp.float32).reshape(1, cout)
    p1 = _group_comembership(cin).astype(cdt)                           # (Cin, Cin)
    p2 = _group_comembership(cout).astype(cdt)                          # (Cout, Cout)

    w1f = _fuse_conv_weight(params["conv1_w"]).astype(cdt)              # (3*Cin, Cout)
    w2f = _fuse_conv_weight(params["conv2_w"]).astype(cdt)              # (3*Cout, Cout)
    cb2 = params["conv2_b"].astype(jnp.float32)
    if has_shortcut:
        cb2 = cb2 + params["nin_b"].astype(jnp.float32)                 # fold nin bias
    cb2 = cb2.reshape(1, cout)

    weight_bytes = 2 * (w1f.size + w2f.size + p1.size + p2.size)

    operands = [x_bf, tproj, g1, b1, p1, w1f, g2, b2, p2, w2f, cb2]
    if has_shortcut:
        wn = params["nin_w"].reshape(cout, cin).T.astype(cdt)           # (Cin, Cout)
        operands.append(wn)
        weight_bytes += wn.size * 2

    mxu_m = 128 if is_v5 else 256
    if block_b is None:
        block_b = _pick_block_b(B, L, cin, cout, weight_bytes=weight_bytes,
                                vmem_limit=vmem_limit, multi_tc=multi_tc,
                                mxu_m=mxu_m)
    assert B % block_b == 0

    flops = 2 * B * L * cout * 3 * (cin + cout) + 4 * B * (cin * cin + cout * cout)
    if has_shortcut:
        flops += 2 * B * L * cin * cout
    cost = pl.CostEstimate(
        flops=int(flops),
        transcendentals=int(B * L * (cin + cout)),                      # SiLU sigmoids
        bytes_accessed=int(B * L * cin * 2 + B * cout * 4
                           + B * L * cout * 2 + weight_bytes),
    )

    kernel = functools.partial(
        _resnet_block_kernel,
        has_shortcut=has_shortcut,
        silu_bf16=not is_v5,                          # v5e has no bf16 VPU/EUP
        inv_n1=1.0 / float(L * (cin // NUM_GROUPS)),
        inv_n2=1.0 / float(L * (cout // NUM_GROUPS)),
    )

    def _build(single_buffer_weights):
        def cspec(shape):
            zeros = (0,) * len(shape)
            idx = lambda i, _z=zeros: _z
            if single_buffer_weights:
                # Weights never change block index: one buffer reclaims VMEM.
                return pl.BlockSpec(shape, idx, pipeline_mode=pl.Buffered(1))
            return pl.BlockSpec(shape, idx)

        in_specs = [
            pl.BlockSpec((block_b, L, cin), lambda i: (i, 0, 0)),       # x
            pl.BlockSpec((block_b, 1, cout), lambda i: (i, 0, 0)),      # temb proj
            cspec((1, cin)), cspec((1, cin)),                           # g1, b1
            cspec((cin, cin)),                                          # P1
            cspec((3 * cin, cout)),                                     # conv1 w
            cspec((1, cout)), cspec((1, cout)),                         # g2, b2
            cspec((cout, cout)),                                        # P2
            cspec((3 * cout, cout)), cspec((1, cout)),                  # conv2 w, bias
        ]
        if has_shortcut:
            in_specs.append(cspec((cin, cout)))                         # nin weight

        return pl.pallas_call(
            kernel,
            out_shape=jax.ShapeDtypeStruct((B, L, cout), out_dtype),
            grid=(B // block_b,),
            in_specs=in_specs,
            out_specs=pl.BlockSpec((block_b, L, cout), lambda i: (i, 0, 0)),
            compiler_params=pltpu.CompilerParams(
                dimension_semantics=("parallel",),
                vmem_limit_bytes=vmem_limit),
            cost_estimate=cost,
        )

    try:
        out = _build(single_buffer_weights=True)(*operands)
    except Exception:
        # Fallback if this jax/libtpu rejects pipeline_mode=pl.Buffered(1).
        out = _build(single_buffer_weights=False)(*operands)
    return out


def resnet_block_1d(x, temb, params, *, block_b=None):
    """PyTorch-layout adapter.  x: (B, Cin, L) NCL, temb: (B, T) -> (B, Cout, L).

    Output is bf16 (halves HBM writeback); cast in the caller if f32 is needed.
    If the surrounding model keeps activations in NLC, call resnet_block_1d_nlc
    directly and skip both transposes.
    """
    x_nlc = jnp.transpose(x, (0, 2, 1))                                 # (B, L, Cin)
    out = resnet_block_1d_nlc(x_nlc, temb, params, block_b=block_b)
    return jnp.transpose(out, (0, 2, 1))                                # (B, Cout, L)


# ----------------------------- pure-JAX reference --------------------------- #

def _ref_groupnorm(x, gamma, beta):
    B, C, L = x.shape
    xr = x.reshape(B, NUM_GROUPS, C // NUM_GROUPS, L)
    mean = xr.mean(axis=(2, 3), keepdims=True)
    var = xr.var(axis=(2, 3), keepdims=True)
    xn = ((xr - mean) / jnp.sqrt(var + EPS)).reshape(B, C, L)
    return xn * gamma[None, :, None] + beta[None, :, None]


def _ref_conv1d(x, w, b):
    out = jax.lax.conv_general_dilated(
        x, w, window_strides=(1,), padding=[(1, 1)],
        dimension_numbers=("NCH", "OIH", "NCH"))
    return out + b[None, :, None]


def ref_forward(x, temb, p):
    h = _ref_groupnorm(x, p["g1"], p["b1"])
    h = h * jax.nn.sigmoid(h)
    h = _ref_conv1d(h, p["conv1_w"], p["conv1_b"])
    t = temb * jax.nn.sigmoid(temb)
    t = t @ p["temb_w"].T + p["temb_b"]
    h = h + t[:, :, None]
    h = _ref_groupnorm(h, p["g2"], p["b2"])
    h = h * jax.nn.sigmoid(h)
    h = _ref_conv1d(h, p["conv2_w"], p["conv2_b"])
    if "nin_w" in p:
        x = jnp.einsum("bcl,oc->bol", x, p["nin_w"]) + p["nin_b"][None, :, None]
    return x + h


# ----------------------------------- main ----------------------------------- #

if __name__ == "__main__":
    def make_params(key, cin, cout, T):
        ks = jax.random.split(key, 12)
        p = {
            "g1": 1.0 + 0.1 * jax.random.normal(ks[0], (cin,), jnp.float32),
            "b1": 0.1 * jax.random.normal(ks[1], (cin,), jnp.float32),
            "conv1_w": 0.1 * jax.random.normal(ks[2], (cout, cin, 3), jnp.float32),
            "conv1_b": 0.05 * jax.random.normal(ks[3], (cout,), jnp.float32),
            "temb_w": 0.1 * jax.random.normal(ks[4], (cout, T), jnp.float32),
            "temb_b": 0.05 * jax.random.normal(ks[5], (cout,), jnp.float32),
            "g2": 1.0 + 0.1 * jax.random.normal(ks[6], (cout,), jnp.float32),
            "b2": 0.1 * jax.random.normal(ks[7], (cout,), jnp.float32),
            "conv2_w": 0.1 * jax.random.normal(ks[8], (cout, cout, 3), jnp.float32),
            "conv2_b": 0.05 * jax.random.normal(ks[9], (cout,), jnp.float32),
        }
        if cin != cout:
            p["nin_w"] = 0.1 * jax.random.normal(ks[10], (cout, cin), jnp.float32)
            p["nin_b"] = 0.05 * jax.random.normal(ks[11], (cout,), jnp.float32)
        return p

    B, Cin, Cout, L, T = 2, 32, 64, 16, 64
    key = jax.random.PRNGKey(0)
    k_x, k_t, k_p1, k_p2 = jax.random.split(key, 4)

    x = jax.random.normal(k_x, (B, Cin, L), jnp.float32)
    temb = jax.random.normal(k_t, (B, T), jnp.float32)

    # Tolerance sized for bf16 MXU operands, bf16 SiLU (v6e/v7x), bf16 group
    # stat operands and a bf16 output, against a full-f32 reference.
    def check(out, ref, name):
        out = out.astype(jnp.float32)
        err = float(jnp.max(jnp.abs(out - ref)))
        tol = 4e-2 * max(1.0, float(jnp.max(jnp.abs(ref))))
        assert err < tol, f"{name}: max abs err {err:.4e} > tol {tol:.4e}"

    # Case 1: in_channels != out_channels (nin_shortcut 1x1-conv path).
    p1 = make_params(k_p1, Cin, Cout, T)
    out1 = jax.block_until_ready(resnet_block_1d(x, temb, p1))
    assert out1.shape == (B, Cout, L), out1.shape
    check(out1, ref_forward(x, temb, p1), "nin_shortcut")

    # Case 2: in_channels == out_channels (identity shortcut, no matmul).
    p2 = make_params(k_p2, Cin, Cin, T)
    out2 = jax.block_until_ready(resnet_block_1d(x, temb, p2))
    assert out2.shape == (B, Cin, L), out2.shape
    check(out2, ref_forward(x, temb, p2), "identity_shortcut")

    print("KERNEL_OK")
</pallas_src>

<mosaic_0001>
module attributes {stable_mosaic.version = 11 : i64} {
  func.func @_resnet_block_kernel(%arg0: i32, %arg1: memref<2x16x32xbf16, #tpu.memory_space<vmem>>, %arg2: memref<2x1x64xf32, #tpu.memory_space<vmem>>, %arg3: memref<1x32xf32, #tpu.memory_space<vmem>>, %arg4: memref<1x32xf32, #tpu.memory_space<vmem>>, %arg5: memref<32x32xbf16, #tpu.memory_space<vmem>>, %arg6: memref<96x64xbf16, #tpu.memory_space<vmem>>, %arg7: memref<1x64xf32, #tpu.memory_space<vmem>>, %arg8: memref<1x64xf32, #tpu.memory_space<vmem>>, %arg9: memref<64x64xbf16, #tpu.memory_space<vmem>>, %arg10: memref<192x64xbf16, #tpu.memory_space<vmem>>, %arg11: memref<1x64xf32, #tpu.memory_space<vmem>>, %arg12: memref<32x64xbf16, #tpu.memory_space<vmem>>, %arg13: memref<2x16x64xbf16, #tpu.memory_space<vmem>>) attributes {dimension_semantics = [#tpu.dimension_semantics<parallel>], iteration_bounds = array<i64: 1>, scalar_prefetch = 0 : i64, scratch_operands = 0 : i64, tpu.core_type = #tpu.core_type<tc>, window_params = [{transform_indices = @transform_0, window_bounds = array<i64: 2, 16, 32>}, {transform_indices = @transform_1, window_bounds = array<i64: 2, 1, 64>}, {pipeline_mode = #tpu.pipeline_mode<synchronous>, transform_indices = @transform_2, window_bounds = array<i64: 1, 32>}, {pipeline_mode = #tpu.pipeline_mode<synchronous>, transform_indices = @transform_3, window_bounds = array<i64: 1, 32>}, {pipeline_mode = #tpu.pipeline_mode<synchronous>, transform_indices = @transform_4, window_bounds = array<i64: 32, 32>}, {pipeline_mode = #tpu.pipeline_mode<synchronous>, transform_indices = @transform_5, window_bounds = array<i64: 96, 64>}, {pipeline_mode = #tpu.pipeline_mode<synchronous>, transform_indices = @transform_6, window_bounds = array<i64: 1, 64>}, {pipeline_mode = #tpu.pipeline_mode<synchronous>, transform_indices = @transform_7, window_bounds = array<i64: 1, 64>}, {pipeline_mode = #tpu.pipeline_mode<synchronous>, transform_indices = @transform_8, window_bounds = array<i64: 64, 64>}, {pipeline_mode = #tpu.pipeline_mode<synchronous>, transform_indices = @transform_9, window_bounds = array<i64: 192, 64>}, {pipeline_mode = #tpu.pipeline_mode<synchronous>, transform_indices = @transform_10, window_bounds = array<i64: 1, 64>}, {pipeline_mode = #tpu.pipeline_mode<synchronous>, transform_indices = @transform_11, window_bounds = array<i64: 32, 64>}, {transform_indices = @transform_12, window_bounds = array<i64: 2, 16, 64>}]} {
    %c0 = arith.constant 0 : index
    %c0_0 = arith.constant 0 : index
    %c0_1 = arith.constant 0 : index
    %0 = vector.load %arg1[%c0, %c0_0, %c0_1] : memref<2x16x32xbf16, #tpu.memory_space<vmem>>, vector<2x16x32xbf16>
    %1 = arith.extf %0 : vector<2x16x32xbf16> to vector<2x16x32xf32>
    %c0_2 = arith.constant 0 : index
    %c0_3 = arith.constant 0 : index
    %2 = vector.load %arg5[%c0_2, %c0_3] : memref<32x32xbf16, #tpu.memory_space<vmem>>, vector<32x32xbf16>
    %c0_4 = arith.constant 0 : index
    %c0_5 = arith.constant 0 : index
    %3 = vector.load %arg3[%c0_4, %c0_5] : memref<1x32xf32, #tpu.memory_space<vmem>>, vector<1x32xf32>
    %c0_6 = arith.constant 0 : index
    %c0_7 = arith.constant 0 : index
    %4 = vector.load %arg4[%c0_6, %c0_7] : memref<1x32xf32, #tpu.memory_space<vmem>>, vector<1x32xf32>
    %cst = arith.constant dense<0.000000e+00> : vector<2x32xf32>
    %5 = vector.multi_reduction <add>, %1, %cst [1] : vector<2x16x32xf32> to vector<2x32xf32>
    %6 = arith.truncf %5 : vector<2x32xf32> to vector<2x32xbf16>
    %cst_8 = arith.constant dense<0.000000e+00> : vector<2x32xf32>
    %7 = tpu.matmul %6, %2, %cst_8 {dimension_numbers = #tpu.dot_dimension_numbers<[1], [0], [0], [1], [0, 0, 1, 1], [], []>} : vector<2x32xbf16>, vector<32x32xbf16>, vector<2x32xf32> -> vector<2x32xf32>
    %cst_9 = arith.constant 6.250000e-02 : f32
    %8 = vector.broadcast %cst_9 : f32 to vector<2x32xf32>
    %9 = arith.mulf %7, %8 : vector<2x32xf32>
    %10 = vector.shape_cast %9 : vector<2x32xf32> to vector<2x1x32xf32>
    %11 = vector.broadcast %10 : vector<2x1x32xf32> to vector<2x16x32xf32>
    %12 = arith.subf %1, %11 : vector<2x16x32xf32>
    %13 = arith.mulf %12, %12 : vector<2x16x32xf32>
    %cst_10 = arith.constant dense<0.000000e+00> : vector<2x32xf32>
    %14 = vector.multi_reduction <add>, %13, %cst_10 [1] : vector<2x16x32xf32> to vector<2x32xf32>
    %15 = arith.truncf %14 : vector<2x32xf32> to vector<2x32xbf16>
    %cst_11 = arith.constant dense<0.000000e+00> : vector<2x32xf32>
    %16 = tpu.matmul %15, %2, %cst_11 {dimension_numbers = #tpu.dot_dimension_numbers<[1], [0], [0], [1], [0, 0, 1, 1], [], []>} : vector<2x32xbf16>, vector<32x32xbf16>, vector<2x32xf32> -> vector<2x32xf32>
    %cst_12 = arith.constant 6.250000e-02 : f32
    %17 = vector.broadcast %cst_12 : f32 to vector<2x32xf32>
    %18 = arith.mulf %16, %17 : vector<2x32xf32>
    %cst_13 = arith.constant 9.99999997E-7 : f32
    %19 = vector.broadcast %cst_13 : f32 to vector<2x32xf32>
    %20 = arith.addf %18, %19 : vector<2x32xf32>
    %21 = math.rsqrt %20 : vector<2x32xf32>
    %22 = vector.shape_cast %21 : vector<2x32xf32> to vector<2x1x32xf32>
    %23 = vector.shape_cast %3 : vector<1x32xf32> to vector<1x1x32xf32>
    %24 = vector.broadcast %23 : vector<1x1x32xf32> to vector<2x1x32xf32>
    %25 = arith.mulf %22, %24 : vector<2x1x32xf32>
    %26 = vector.broadcast %25 : vector<2x1x32xf32> to vector<2x16x32xf32>
    %27 = arith.mulf %12, %26 : vector<2x16x32xf32>
    %28 = vector.shape_cast %4 : vector<1x32xf32> to vector<1x1x32xf32>
    %29 = vector.broadcast %28 : vector<1x1x32xf32> to vector<2x16x32xf32>
    %30 = arith.addf %27, %29 : vector<2x16x32xf32>
    %31 = arith.truncf %30 : vector<2x16x32xf32> to vector<2x16x32xbf16>
    %32 = arith.negf %31 : vector<2x16x32xbf16>
    %33 = math.exp %32 : vector<2x16x32xbf16>
    %cst_14 = arith.constant 1.000000e+00 : bf16
    %34 = vector.broadcast %cst_14 : bf16 to vector<2x16x32xbf16>
    %35 = arith.addf %34, %33 : vector<2x16x32xbf16>
    %36 = arith.divf %34, %35 : vector<2x16x32xbf16>
    %37 = arith.mulf %31, %36 : vector<2x16x32xbf16>
    %c0_15 = arith.constant 0 : index
    %c0_16 = arith.constant 0 : index
    %38 = vector.load %arg6[%c0_15, %c0_16] : memref<96x64xbf16, #tpu.memory_space<vmem>>, vector<96x64xbf16>
    %cst_17 = arith.constant 0.000000e+00 : bf16
    %39 = vector.broadcast %cst_17 : bf16 to vector<2x1x32xbf16>
    %40 = vector.extract_strided_slice %37 {offsets = [0, 0, 0], sizes = [2, 15, 32], strides = [1, 1, 1]} : vector<2x16x32xbf16> to vector<2x15x32xbf16>
    %41 = tpu.concatenate %39, %40 in 1 : vector<2x1x32xbf16>, vector<2x15x32xbf16> -> vector<2x16x32xbf16>
    %42 = vector.extract_strided_slice %37 {offsets = [0, 1, 0], sizes = [2, 15, 32], strides = [1, 1, 1]} : vector<2x16x32xbf16> to vector<2x15x32xbf16>
    %43 = tpu.concatenate %42, %39 in 1 : vector<2x15x32xbf16>, vector<2x1x32xbf16> -> vector<2x16x32xbf16>
    %44 = tpu.concatenate %41, %37, %43 in 2 : vector<2x16x32xbf16>, vector<2x16x32xbf16>, vector<2x16x32xbf16> -> vector<2x16x96xbf16>
    %45 = vector.shape_cast %44 : vector<2x16x96xbf16> to vector<32x96xbf16>
    %cst_18 = arith.constant dense<0.000000e+00> : vector<32x64xf32>
    %46 = tpu.matmul %45, %38, %cst_18 {dimension_numbers = #tpu.dot_dimension_numbers<[1], [0], [0], [1], [0, 0, 1, 1], [], []>} : vector<32x96xbf16>, vector<96x64xbf16>, vector<32x64xf32> -> vector<32x64xf32>
    %47 = vector.shape_cast %46 : vector<32x64xf32> to vector<2x16x64xf32>
    %c0_19 = arith.constant 0 : index
    %c0_20 = arith.constant 0 : index
    %c0_21 = arith.constant 0 : index
    %48 = vector.load %arg2[%c0_19, %c0_20, %c0_21] : memref<2x1x64xf32, #tpu.memory_space<vmem>>, vector<2x1x64xf32>
    %49 = vector.broadcast %48 : vector<2x1x64xf32> to vector<2x16x64xf32>
    %50 = arith.addf %47, %49 : vector<2x16x64xf32>
    %c0_22 = arith.constant 0 : index
    %c0_23 = arith.constant 0 : index
    %51 = vector.load %arg9[%c0_22, %c0_23] : memref<64x64xbf16, #tpu.memory_space<vmem>>, vector<64x64xbf16>
    %c0_24 = arith.constant 0 : index
    %c0_25 = arith.constant 0 : index
    %52 = vector.load %arg7[%c0_24, %c0_25] : memref<1x64xf32, #tpu.memory_space<vmem>>, vector<1x64xf32>
    %c0_26 = arith.constant 0 : index
    %c0_27 = arith.constant 0 : index
    %53 = vector.load %arg8[%c0_26, %c0_27] : memref<1x64xf32, #tpu.memory_space<vmem>>, vector<1x64xf32>
    %cst_28 = arith.constant dense<0.000000e+00> : vector<2x64xf32>
    %54 = vector.multi_reduction <add>, %50, %cst_28 [1] : vector<2x16x64xf32> to vector<2x64xf32>
    %55 = arith.truncf %54 : vector<2x64xf32> to vector<2x64xbf16>
    %cst_29 = arith.constant dense<0.000000e+00> : vector<2x64xf32>
    %56 = tpu.matmul %55, %51, %cst_29 {dimension_numbers = #tpu.dot_dimension_numbers<[1], [0], [0], [1], [0, 0, 1, 1], [], []>} : vector<2x64xbf16>, vector<64x64xbf16>, vector<2x64xf32> -> vector<2x64xf32>
    %cst_30 = arith.constant 3.125000e-02 : f32
    %57 = vector.broadcast %cst_30 : f32 to vector<2x64xf32>
    %58 = arith.mulf %56, %57 : vector<2x64xf32>
    %59 = vector.shape_cast %58 : vector<2x64xf32> to vector<2x1x64xf32>
    %60 = vector.broadcast %59 : vector<2x1x64xf32> to vector<2x16x64xf32>
    %61 = arith.subf %50, %60 : vector<2x16x64xf32>
    %62 = arith.mulf %61, %61 : vector<2x16x64xf32>
    %cst_31 = arith.constant dense<0.000000e+00> : vector<2x64xf32>
    %63 = vector.multi_reduction <add>, %62, %cst_31 [1] : vector<2x16x64xf32> to vector<2x64xf32>
    %64 = arith.truncf %63 : vector<2x64xf32> to vector<2x64xbf16>
    %cst_32 = arith.constant dense<0.000000e+00> : vector<2x64xf32>
    %65 = tpu.matmul %64, %51, %cst_32 {dimension_numbers = #tpu.dot_dimension_numbers<[1], [0], [0], [1], [0, 0, 1, 1], [], []>} : vector<2x64xbf16>, vector<64x64xbf16>, vector<2x64xf32> -> vector<2x64xf32>
    %cst_33 = arith.constant 3.125000e-02 : f32
    %66 = vector.broadcast %cst_33 : f32 to vector<2x64xf32>
    %67 = arith.mulf %65, %66 : vector<2x64xf32>
    %cst_34 = arith.constant 9.99999997E-7 : f32
    %68 = vector.broadcast %cst_34 : f32 to vector<2x64xf32>
    %69 = arith.addf %67, %68 : vector<2x64xf32>
    %70 = math.rsqrt %69 : vector<2x64xf32>
    %71 = vector.shape_cast %70 : vector<2x64xf32> to vector<2x1x64xf32>
    %72 = vector.shape_cast %52 : vector<1x64xf32> to vector<1x1x64xf32>
    %73 = vector.broadcast %72 : vector<1x1x64xf32> to vector<2x1x64xf32>
    %74 = arith.mulf %71, %73 : vector<2x1x64xf32>
    %75 = vector.broadcast %74 : vector<2x1x64xf32> to vector<2x16x64xf32>
    %76 = arith.mulf %61, %75 : vector<2x16x64xf32>
    %77 = vector.shape_cast %53 : vector<1x64xf32> to vector<1x1x64xf32>
    %78 = vector.broadcast %77 : vector<1x1x64xf32> to vector<2x16x64xf32>
    %79 = arith.addf %76, %78 : vector<2x16x64xf32>
    %80 = arith.truncf %79 : vector<2x16x64xf32> to vector<2x16x64xbf16>
    %81 = arith.negf %80 : vector<2x16x64xbf16>
    %82 = math.exp %81 : vector<2x16x64xbf16>
    %cst_35 = arith.constant 1.000000e+00 : bf16
    %83 = vector.broadcast %cst_35 : bf16 to vector<2x16x64xbf16>
    %84 = arith.addf %83, %82 : vector<2x16x64xbf16>
    %85 = arith.divf %83, %84 : vector<2x16x64xbf16>
    %86 = arith.mulf %80, %85 : vector<2x16x64xbf16>
    %c0_36 = arith.constant 0 : index
    %c0_37 = arith.constant 0 : index
    %87 = vector.load %arg10[%c0_36, %c0_37] : memref<192x64xbf16, #tpu.memory_space<vmem>>, vector<192x64xbf16>
    %cst_38 = arith.constant 0.000000e+00 : bf16
    %88 = vector.broadcast %cst_38 : bf16 to vector<2x1x64xbf16>
    %89 = vector.extract_strided_slice %86 {offsets = [0, 0, 0], sizes = [2, 15, 64], strides = [1, 1, 1]} : vector<2x16x64xbf16> to vector<2x15x64xbf16>
    %90 = tpu.concatenate %88, %89 in 1 : vector<2x1x64xbf16>, vector<2x15x64xbf16> -> vector<2x16x64xbf16>
    %91 = vector.extract_strided_slice %86 {offsets = [0, 1, 0], sizes = [2, 15, 64], strides = [1, 1, 1]} : vector<2x16x64xbf16> to vector<2x15x64xbf16>
    %92 = tpu.concatenate %91, %88 in 1 : vector<2x15x64xbf16>, vector<2x1x64xbf16> -> vector<2x16x64xbf16>
    %93 = tpu.concatenate %90, %86, %92 in 2 : vector<2x16x64xbf16>, vector<2x16x64xbf16>, vector<2x16x64xbf16> -> vector<2x16x192xbf16>
    %94 = vector.shape_cast %93 : vector<2x16x192xbf16> to vector<32x192xbf16>
    %cst_39 = arith.constant dense<0.000000e+00> : vector<32x64xf32>
    %95 = tpu.matmul %94, %87, %cst_39 {dimension_numbers = #tpu.dot_dimension_numbers<[1], [0], [0], [1], [0, 0, 1, 1], [], []>} : vector<32x192xbf16>, vector<192x64xbf16>, vector<32x64xf32> -> vector<32x64xf32>
    %96 = vector.shape_cast %95 : vector<32x64xf32> to vector<2x16x64xf32>
    %c0_40 = arith.constant 0 : index
    %c0_41 = arith.constant 0 : index
    %97 = vector.load %arg11[%c0_40, %c0_41] : memref<1x64xf32, #tpu.memory_space<vmem>>, vector<1x64xf32>
    %98 = vector.shape_cast %97 : vector<1x64xf32> to vector<1x1x64xf32>
    %99 = vector.broadcast %98 : vector<1x1x64xf32> to vector<2x16x64xf32>
    %100 = arith.addf %96, %99 : vector<2x16x64xf32>
    %c0_42 = arith.constant 0 : index
    %c0_43 = arith.constant 0 : index
    %c0_44 = arith.constant 0 : index
    %101 = vector.load %arg1[%c0_42, %c0_43, %c0_44] : memref<2x16x32xbf16, #tpu.memory_space<vmem>>, vector<2x16x32xbf16>
    %102 = vector.shape_cast %101 : vector<2x16x32xbf16> to vector<32x32xbf16>
    %c0_45 = arith.constant 0 : index
    %c0_46 = arith.constant 0 : index
    %103 = vector.load %arg12[%c0_45, %c0_46] : memref<32x64xbf16, #tpu.memory_space<vmem>>, vector<32x64xbf16>
    %cst_47 = arith.constant dense<0.000000e+00> : vector<32x64xf32>
    %104 = tpu.matmul %102, %103, %cst_47 {dimension_numbers = #tpu.dot_dimension_numbers<[1], [0], [0], [1], [0, 0, 1, 1], [], []>} : vector<32x32xbf16>, vector<32x64xbf16>, vector<32x64xf32> -> vector<32x64xf32>
    %105 = vector.shape_cast %104 : vector<32x64xf32> to vector<2x16x64xf32>
    %106 = arith.addf %105, %100 : vector<2x16x64xf32>
    %107 = arith.truncf %106 : vector<2x16x64xf32> to vector<2x16x64xbf16>
    %c0_48 = arith.constant 0 : index
    %c0_49 = arith.constant 0 : index
    %c0_50 = arith.constant 0 : index
    %108 = vector.load %arg13[%c0_48, %c0_49, %c0_50] : memref<2x16x64xbf16, #tpu.memory_space<vmem>>, vector<2x16x64xbf16>
    tpu.vector_store %arg13[%c0_48, %c0_49, %c0_50], %107 {strides = array<i32>} : memref<2x16x64xbf16, #tpu.memory_space<vmem>>, vector<2x16x64xbf16>,
    return
  }
  func.func @transform_0(%arg0: i32) -> (i32, i32, i32) {
    %c0_i32 = arith.constant 0 : i32
    %c0_i32_0 = arith.constant 0 : i32
    %c0_i32_1 = arith.constant 0 : i32
    return %arg0, %c0_i32, %c0_i32_0 : i32, i32, i32
  }
  func.func @transform_1(%arg0: i32) -> (i32, i32, i32) {
    %c0_i32 = arith.constant 0 : i32
    %c0_i32_0 = arith.constant 0 : i32
    %c0_i32_1 = arith.constant 0 : i32
    return %arg0, %c0_i32, %c0_i32_0 : i32, i32, i32
  }
  func.func @transform_2(%arg0: i32) -> (i32, i32) {
    %c0_i32 = arith.constant 0 : i32
    %c0_i32_0 = arith.constant 0 : i32
    %c0_i32_1 = arith.constant 0 : i32
    return %c0_i32, %c0_i32_0 : i32, i32
  }
  func.func @transform_3(%arg0: i32) -> (i32, i32) {
    %c0_i32 = arith.constant 0 : i32
    %c0_i32_0 = arith.constant 0 : i32
    %c0_i32_1 = arith.constant 0 : i32
    return %c0_i32, %c0_i32_0 : i32, i32
  }
  func.func @transform_4(%arg0: i32) -> (i32, i32) {
    %c0_i32 = arith.constant 0 : i32
    %c0_i32_0 = arith.constant 0 : i32
    %c0_i32_1 = arith.constant 0 : i32
    return %c0_i32, %c0_i32_0 : i32, i32
  }
  func.func @transform_5(%arg0: i32) -> (i32, i32) {
    %c0_i32 = arith.constant 0 : i32
    %c0_i32_0 = arith.constant 0 : i32
    %c0_i32_1 = arith.constant 0 : i32
    return %c0_i32, %c0_i32_0 : i32, i32
  }
  func.func @transform_6(%arg0: i32) -> (i32, i32) {
    %c0_i32 = arith.constant 0 : i32
    %c0_i32_0 = arith.constant 0 : i32
    %c0_i32_1 = arith.constant 0 : i32
    return %c0_i32, %c0_i32_0 : i32, i32
  }
  func.func @transform_7(%arg0: i32) -> (i32, i32) {
    %c0_i32 = arith.constant 0 : i32
    %c0_i32_0 = arith.constant 0 : i32
    %c0_i32_1 = arith.constant 0 : i32
    return %c0_i32, %c0_i32_0 : i32, i32
  }
  func.func @transform_8(%arg0: i32) -> (i32, i32) {
    %c0_i32 = arith.constant 0 : i32
    %c0_i32_0 = arith.constant 0 : i32
    %c0_i32_1 = arith.constant 0 : i32
    return %c0_i32, %c0_i32_0 : i32, i32
  }
  func.func @transform_9(%arg0: i32) -> (i32, i32) {
    %c0_i32 = arith.constant 0 : i32
    %c0_i32_0 = arith.constant 0 : i32
    %c0_i32_1 = arith.constant 0 : i32
    return %c0_i32, %c0_i32_0 : i32, i32
  }
  func.func @transform_10(%arg0: i32) -> (i32, i32) {
    %c0_i32 = arith.constant 0 : i32
    %c0_i32_0 = arith.constant 0 : i32
    %c0_i32_1 = arith.constant 0 : i32
    return %c0_i32, %c0_i32_0 : i32, i32
  }
  func.func @transform_11(%arg0: i32) -> (i32, i32) {
    %c0_i32 = arith.constant 0 : i32
    %c0_i32_0 = arith.constant 0 : i32
    %c0_i32_1 = arith.constant 0 : i32
    return %c0_i32, %c0_i32_0 : i32, i32
  }
  func.func @transform_12(%arg0: i32) -> (i32, i32, i32) {
    %c0_i32 = arith.constant 0 : i32
    %c0_i32_0 = arith.constant 0 : i32
    %c0_i32_1 = arith.constant 0 : i32
    return %arg0, %c0_i32, %c0_i32_0 : i32, i32, i32
  }
}

module attributes {stable_mosaic.version = 11 : i64} {
  func.func @_resnet_block_kernel(%arg0: i32, %arg1: memref<2x16x32xbf16, #tpu.memory_space<vmem>>, %arg2: memref<2x1x64xf32, #tpu.memory_space<vmem>>, %arg3: memref<1x32xf32, #tpu.memory_space<vmem>>, %arg4: memref<1x32xf32, #tpu.memory_space<vmem>>, %arg5: memref<32x32xbf16, #tpu.memory_space<vmem>>, %arg6: memref<96x64xbf16, #tpu.memory_space<vmem>>, %arg7: memref<1x64xf32, #tpu.memory_space<vmem>>, %arg8: memref<1x64xf32, #tpu.memory_space<vmem>>, %arg9: memref<64x64xbf16, #tpu.memory_space<vmem>>, %arg10: memref<192x64xbf16, #tpu.memory_space<vmem>>, %arg11: memref<1x64xf32, #tpu.memory_space<vmem>>, %arg12: memref<32x64xbf16, #tpu.memory_space<vmem>>, %arg13: memref<2x16x64xbf16, #tpu.memory_space<vmem>>) attributes {dimension_semantics = [#tpu.dimension_semantics<parallel>], iteration_bounds = array<i64: 1>, scalar_prefetch = 0 : i64, scratch_operands = 0 : i64, tpu.core_type = #tpu.core_type<tc>, window_params = [{transform_indices = @transform_0, window_bounds = array<i64: 2, 16, 32>}, {transform_indices = @transform_1, window_bounds = array<i64: 2, 1, 64>}, {pipeline_mode = #tpu.pipeline_mode<synchronous>, transform_indices = @transform_2, window_bounds = array<i64: 1, 32>}, {pipeline_mode = #tpu.pipeline_mode<synchronous>, transform_indices = @transform_3, window_bounds = array<i64: 1, 32>}, {pipeline_mode = #tpu.pipeline_mode<synchronous>, transform_indices = @transform_4, window_bounds = array<i64: 32, 32>}, {pipeline_mode = #tpu.pipeline_mode<synchronous>, transform_indices = @transform_5, window_bounds = array<i64: 96, 64>}, {pipeline_mode = #tpu.pipeline_mode<synchronous>, transform_indices = @transform_6, window_bounds = array<i64: 1, 64>}, {pipeline_mode = #tpu.pipeline_mode<synchronous>, transform_indices = @transform_7, window_bounds = array<i64: 1, 64>}, {pipeline_mode = #tpu.pipeline_mode<synchronous>, transform_indices = @transform_8, window_bounds = array<i64: 64, 64>}, {pipeline_mode = #tpu.pipeline_mode<synchronous>, transform_indices = @transform_9, window_bounds = array<i64: 192, 64>}, {pipeline_mode = #tpu.pipeline_mode<synchronous>, transform_indices = @transform_10, window_bounds = array<i64: 1, 64>}, {pipeline_mode = #tpu.pipeline_mode<synchronous>, transform_indices = @transform_11, window_bounds = array<i64: 32, 64>}, {transform_indices = @transform_12, window_bounds = array<i64: 2, 16, 64>}]} {
    %c0 = arith.constant 0 : index
    %c0_0 = arith.constant 0 : index
    %c0_1 = arith.constant 0 : index
    %0 = vector.load %arg1[%c0, %c0_0, %c0_1] : memref<2x16x32xbf16, #tpu.memory_space<vmem>>, vector<2x16x32xbf16>
    %1 = arith.extf %0 : vector<2x16x32xbf16> to vector<2x16x32xf32>
    %c0_2 = arith.constant 0 : index
    %c0_3 = arith.constant 0 : index
    %2 = vector.load %arg5[%c0_2, %c0_3] : memref<32x32xbf16, #tpu.memory_space<vmem>>, vector<32x32xbf16>
    %c0_4 = arith.constant 0 : index
    %c0_5 = arith.constant 0 : index
    %3 = vector.load %arg3[%c0_4, %c0_5] : memref<1x32xf32, #tpu.memory_space<vmem>>, vector<1x32xf32>
    %c0_6 = arith.constant 0 : index
    %c0_7 = arith.constant 0 : index
    %4 = vector.load %arg4[%c0_6, %c0_7] : memref<1x32xf32, #tpu.memory_space<vmem>>, vector<1x32xf32>
    %cst = arith.constant dense<0.000000e+00> : vector<2x32xf32>
    %5 = vector.multi_reduction <add>, %1, %cst [1] : vector<2x16x32xf32> to vector<2x32xf32>
    %6 = arith.truncf %5 : vector<2x32xf32> to vector<2x32xbf16>
    %cst_8 = arith.constant dense<0.000000e+00> : vector<2x32xf32>
    %7 = tpu.matmul %6, %2, %cst_8 {dimension_numbers = #tpu.dot_dimension_numbers<[1], [0], [0], [1], [0, 0, 1, 1], [], []>} : vector<2x32xbf16>, vector<32x32xbf16>, vector<2x32xf32> -> vector<2x32xf32>
    %cst_9 = arith.constant 6.250000e-02 : f32
    %8 = vector.broadcast %cst_9 : f32 to vector<2x32xf32>
    %9 = arith.mulf %7, %8 : vector<2x32xf32>
    %10 = vector.shape_cast %9 : vector<2x32xf32> to vector<2x1x32xf32>
    %11 = vector.broadcast %10 : vector<2x1x32xf32> to vector<2x16x32xf32>
    %12 = arith.subf %1, %11 : vector<2x16x32xf32>
    %13 = arith.mulf %12, %12 : vector<2x16x32xf32>
    %cst_10 = arith.constant dense<0.000000e+00> : vector<2x32xf32>
    %14 = vector.multi_reduction <add>, %13, %cst_10 [1] : vector<2x16x32xf32> to vector<2x32xf32>
    %15 = arith.truncf %14 : vector<2x32xf32> to vector<2x32xbf16>
    %cst_11 = arith.constant dense<0.000000e+00> : vector<2x32xf32>
    %16 = tpu.matmul %15, %2, %cst_11 {dimension_numbers = #tpu.dot_dimension_numbers<[1], [0], [0], [1], [0, 0, 1, 1], [], []>} : vector<2x32xbf16>, vector<32x32xbf16>, vector<2x32xf32> -> vector<2x32xf32>
    %cst_12 = arith.constant 6.250000e-02 : f32
    %17 = vector.broadcast %cst_12 : f32 to vector<2x32xf32>
    %18 = arith.mulf %16, %17 : vector<2x32xf32>
    %cst_13 = arith.constant 9.99999997E-7 : f32
    %19 = vector.broadcast %cst_13 : f32 to vector<2x32xf32>
    %20 = arith.addf %18, %19 : vector<2x32xf32>
    %21 = math.rsqrt %20 : vector<2x32xf32>
    %22 = vector.shape_cast %21 : vector<2x32xf32> to vector<2x1x32xf32>
    %23 = vector.shape_cast %3 : vector<1x32xf32> to vector<1x1x32xf32>
    %24 = vector.broadcast %23 : vector<1x1x32xf32> to vector<2x1x32xf32>
    %25 = arith.mulf %22, %24 : vector<2x1x32xf32>
    %26 = vector.broadcast %25 : vector<2x1x32xf32> to vector<2x16x32xf32>
    %27 = arith.mulf %12, %26 : vector<2x16x32xf32>
    %28 = vector.shape_cast %4 : vector<1x32xf32> to vector<1x1x32xf32>
    %29 = vector.broadcast %28 : vector<1x1x32xf32> to vector<2x16x32xf32>
    %30 = arith.addf %27, %29 : vector<2x16x32xf32>
    %31 = arith.truncf %30 : vector<2x16x32xf32> to vector<2x16x32xbf16>
    %32 = arith.negf %31 : vector<2x16x32xbf16>
    %33 = math.exp %32 : vector<2x16x32xbf16>
    %cst_14 = arith.constant 1.000000e+00 : bf16
    %34 = vector.broadcast %cst_14 : bf16 to vector<2x16x32xbf16>
    %35 = arith.addf %34, %33 : vector<2x16x32xbf16>
    %36 = arith.divf %34, %35 : vector<2x16x32xbf16>
    %37 = arith.mulf %31, %36 : vector<2x16x32xbf16>
    %c0_15 = arith.constant 0 : index
    %c0_16 = arith.constant 0 : index
    %38 = vector.load %arg6[%c0_15, %c0_16] : memref<96x64xbf16, #tpu.memory_space<vmem>>, vector<96x64xbf16>
    %cst_17 = arith.constant 0.000000e+00 : bf16
    %39 = vector.broadcast %cst_17 : bf16 to vector<2x1x32xbf16>
    %40 = vector.extract_strided_slice %37 {offsets = [0, 0, 0], sizes = [2, 15, 32], strides = [1, 1, 1]} : vector<2x16x32xbf16> to vector<2x15x32xbf16>
    %41 = tpu.concatenate %39, %40 in 1 : vector<2x1x32xbf16>, vector<2x15x32xbf16> -> vector<2x16x32xbf16>
    %42 = vector.extract_strided_slice %37 {offsets = [0, 1, 0], sizes = [2, 15, 32], strides = [1, 1, 1]} : vector<2x16x32xbf16> to vector<2x15x32xbf16>
    %43 = tpu.concatenate %42, %39 in 1 : vector<2x15x32xbf16>, vector<2x1x32xbf16> -> vector<2x16x32xbf16>
    %44 = tpu.concatenate %41, %37, %43 in 2 : vector<2x16x32xbf16>, vector<2x16x32xbf16>, vector<2x16x32xbf16> -> vector<2x16x96xbf16>
    %45 = vector.shape_cast %44 : vector<2x16x96xbf16> to vector<32x96xbf16>
    %cst_18 = arith.constant dense<0.000000e+00> : vector<32x64xf32>
    %46 = tpu.matmul %45, %38, %cst_18 {dimension_numbers = #tpu.dot_dimension_numbers<[1], [0], [0], [1], [0, 0, 1, 1], [], []>} : vector<32x96xbf16>, vector<96x64xbf16>, vector<32x64xf32> -> vector<32x64xf32>
    %47 = vector.shape_cast %46 : vector<32x64xf32> to vector<2x16x64xf32>
    %c0_19 = arith.constant 0 : index
    %c0_20 = arith.constant 0 : index
    %c0_21 = arith.constant 0 : index
    %48 = vector.load %arg2[%c0_19, %c0_20, %c0_21] : memref<2x1x64xf32, #tpu.memory_space<vmem>>, vector<2x1x64xf32>
    %49 = vector.broadcast %48 : vector<2x1x64xf32> to vector<2x16x64xf32>
    %50 = arith.addf %47, %49 : vector<2x16x64xf32>
    %c0_22 = arith.constant 0 : index
    %c0_23 = arith.constant 0 : index
    %51 = vector.load %arg9[%c0_22, %c0_23] : memref<64x64xbf16, #tpu.memory_space<vmem>>, vector<64x64xbf16>
    %c0_24 = arith.constant 0 : index
    %c0_25 = arith.constant 0 : index
    %52 = vector.load %arg7[%c0_24, %c0_25] : memref<1x64xf32, #tpu.memory_space<vmem>>, vector<1x64xf32>
    %c0_26 = arith.constant 0 : index
    %c0_27 = arith.constant 0 : index
    %53 = vector.load %arg8[%c0_26, %c0_27] : memref<1x64xf32, #tpu.memory_space<vmem>>, vector<1x64xf32>
    %cst_28 = arith.constant dense<0.000000e+00> : vector<2x64xf32>
    %54 = vector.multi_reduction <add>, %50, %cst_28 [1] : vector<2x16x64xf32> to vector<2x64xf32>
    %55 = arith.truncf %54 : vector<2x64xf32> to vector<2x64xbf16>
    %cst_29 = arith.constant dense<0.000000e+00> : vector<2x64xf32>
    %56 = tpu.matmul %55, %51, %cst_29 {dimension_numbers = #tpu.dot_dimension_numbers<[1], [0], [0], [1], [0, 0, 1, 1], [], []>} : vector<2x64xbf16>, vector<64x64xbf16>, vector<2x64xf32> -> vector<2x64xf32>
    %cst_30 = arith.constant 3.125000e-02 : f32
    %57 = vector.broadcast %cst_30 : f32 to vector<2x64xf32>
    %58 = arith.mulf %56, %57 : vector<2x64xf32>
    %59 = vector.shape_cast %58 : vector<2x64xf32> to vector<2x1x64xf32>
    %60 = vector.broadcast %59 : vector<2x1x64xf32> to vector<2x16x64xf32>
    %61 = arith.subf %50, %60 : vector<2x16x64xf32>
    %62 = arith.mulf %61, %61 : vector<2x16x64xf32>
    %cst_31 = arith.constant dense<0.000000e+00> : vector<2x64xf32>
    %63 = vector.multi_reduction <add>, %62, %cst_31 [1] : vector<2x16x64xf32> to vector<2x64xf32>
    %64 = arith.truncf %63 : vector<2x64xf32> to vector<2x64xbf16>
    %cst_32 = arith.constant dense<0.000000e+00> : vector<2x64xf32>
    %65 = tpu.matmul %64, %51, %cst_32 {dimension_numbers = #tpu.dot_dimension_numbers<[1], [0], [0], [1], [0, 0, 1, 1], [], []>} : vector<2x64xbf16>, vector<64x64xbf16>, vector<2x64xf32> -> vector<2x64xf32>
    %cst_33 = arith.constant 3.125000e-02 : f32
    %66 = vector.broadcast %cst_33 : f32 to vector<2x64xf32>
    %67 = arith.mulf %65, %66 : vector<2x64xf32>
    %cst_34 = arith.constant 9.99999997E-7 : f32
    %68 = vector.broadcast %cst_34 : f32 to vector<2x64xf32>
    %69 = arith.addf %67, %68 : vector<2x64xf32>
    %70 = math.rsqrt %69 : vector<2x64xf32>
    %71 = vector.shape_cast %70 : vector<2x64xf32> to vector<2x1x64xf32>
    %72 = vector.shape_cast %52 : vector<1x64xf32> to vector<1x1x64xf32>
    %73 = vector.broadcast %72 : vector<1x1x64xf32> to vector<2x1x64xf32>
    %74 = arith.mulf %71, %73 : vector<2x1x64xf32>
    %75 = vector.broadcast %74 : vector<2x1x64xf32> to vector<2x16x64xf32>
    %76 = arith.mulf %61, %75 : vector<2x16x64xf32>
    %77 = vector.shape_cast %53 : vector<1x64xf32> to vector<1x1x64xf32>
    %78 = vector.broadcast %77 : vector<1x1x64xf32> to vector<2x16x64xf32>
    %79 = arith.addf %76, %78 : vector<2x16x64xf32>
    %80 = arith.truncf %79 : vector<2x16x64xf32> to vector<2x16x64xbf16>
    %81 = arith.negf %80 : vector<2x16x64xbf16>
    %82 = math.exp %81 : vector<2x16x64xbf16>
    %cst_35 = arith.constant 1.000000e+00 : bf16
    %83 = vector.broadcast %cst_35 : bf16 to vector<2x16x64xbf16>
    %84 = arith.addf %83, %82 : vector<2x16x64xbf16>
    %85 = arith.divf %83, %84 : vector<2x16x64xbf16>
    %86 = arith.mulf %80, %85 : vector<2x16x64xbf16>
    %c0_36 = arith.constant 0 : index
    %c0_37 = arith.constant 0 : index
    %87 = vector.load %arg10[%c0_36, %c0_37] : memref<192x64xbf16, #tpu.memory_space<vmem>>, vector<192x64xbf16>
    %cst_38 = arith.constant 0.000000e+00 : bf16
    %88 = vector.broadcast %cst_38 : bf16 to vector<2x1x64xbf16>
    %89 = vector.extract_strided_slice %86 {offsets = [0, 0, 0], sizes = [2, 15, 64], strides = [1, 1, 1]} : vector<2x16x64xbf16> to vector<2x15x64xbf16>
    %90 = tpu.concatenate %88, %89 in 1 : vector<2x1x64xbf16>, vector<2x15x64xbf16> -> vector<2x16x64xbf16>
    %91 = vector.extract_strided_slice %86 {offsets = [0, 1, 0], sizes = [2, 15, 64], strides = [1, 1, 1]} : vector<2x16x64xbf16> to vector<2x15x64xbf16>
    %92 = tpu.concatenate %91, %88 in 1 : vector<2x15x64xbf16>, vector<2x1x64xbf16> -> vector<2x16x64xbf16>
    %93 = tpu.concatenate %90, %86, %92 in 2 : vector<2x16x64xbf16>, vector<2x16x64xbf16>, vector<2x16x64xbf16> -> vector<2x16x192xbf16>
    %94 = vector.shape_cast %93 : vector<2x16x192xbf16> to vector<32x192xbf16>
    %cst_39 = arith.constant dense<0.000000e+00> : vector<32x64xf32>
    %95 = tpu.matmul %94, %87, %cst_39 {dimension_numbers = #tpu.dot_dimension_numbers<[1], [0], [0], [1], [0, 0, 1, 1], [], []>} : vector<32x192xbf16>, vector<192x64xbf16>, vector<32x64xf32> -> vector<32x64xf32>
    %96 = vector.shape_cast %95 : vector<32x64xf32> to vector<2x16x64xf32>
    %c0_40 = arith.constant 0 : index
    %c0_41 = arith.constant 0 : index
    %97 = vector.load %arg11[%c0_40, %c0_41] : memref<1x64xf32, #tpu.memory_space<vmem>>, vector<1x64xf32>
    %98 = vector.shape_cast %97 : vector<1x64xf32> to vector<1x1x64xf32>
    %99 = vector.broadcast %98 : vector<1x1x64xf32> to vector<2x16x64xf32>
    %100 = arith.addf %96, %99 : vector<2x16x64xf32>
    %c0_42 = arith.constant 0 : index
    %c0_43 = arith.constant 0 : index
    %c0_44 = arith.constant 0 : index
    %101 = vector.load %arg1[%c0_42, %c0_43, %c0_44] : memref<2x16x32xbf16, #tpu.memory_space<vmem>>, vector<2x16x32xbf16>
    %102 = vector.shape_cast %101 : vector<2x16x32xbf16> to vector<32x32xbf16>
    %c0_45 = arith.constant 0 : index
    %c0_46 = arith.constant 0 : index
    %103 = vector.load %arg12[%c0_45, %c0_46] : memref<32x64xbf16, #tpu.memory_space<vmem>>, vector<32x64xbf16>
    %cst_47 = arith.constant dense<0.000000e+00> : vector<32x64xf32>
    %104 = tpu.matmul %102, %103, %cst_47 {dimension_numbers = #tpu.dot_dimension_numbers<[1], [0], [0], [1], [0, 0, 1, 1], [], []>} : vector<32x32xbf16>, vector<32x64xbf16>, vector<32x64xf32> -> vector<32x64xf32>
    %105 = vector.shape_cast %104 : vector<32x64xf32> to vector<2x16x64xf32>
    %106 = arith.addf %105, %100 : vector<2x16x64xf32>
    %107 = arith.truncf %106 : vector<2x16x64xf32> to vector<2x16x64xbf16>
    %c0_48 = arith.constant 0 : index
    %c0_49 = arith.constant 0 : index
    %c0_50 = arith.constant 0 : index
    %108 = vector.load %arg13[%c0_48, %c0_49, %c0_50] : memref<2x16x64xbf16, #tpu.memory_space<vmem>>, vector<2x16x64xbf16>
    tpu.vector_store %arg13[%c0_48, %c0_49, %c0_50], %107 {strides = array<i32>} : memref<2x16x64xbf16, #tpu.memory_space<vmem>>, vector<2x16x64xbf16>,
    return
  }
  func.func @transform_0(%arg0: i32) -> (i32, i32, i32) {
    %c0_i32 = arith.constant 0 : i32
    %c0_i32_0 = arith.constant 0 : i32
    %c0_i32_1 = arith.constant 0 : i32
    return %arg0, %c0_i32, %c0_i32_0 : i32, i32, i32
  }
  func.func @transform_1(%arg0: i32) -> (i32, i32, i32) {
    %c0_i32 = arith.constant 0 : i32
    %c0_i32_0 = arith.constant 0 : i32
    %c0_i32_1 = arith.constant 0 : i32
    return %arg0, %c0_i32, %c0_i32_0 : i32, i32, i32
  }
  func.func @transform_2(%arg0: i32) -> (i32, i32) {
    %c0_i32 = arith.constant 0 : i32
    %c0_i32_0 = arith.constant 0 : i32
    %c0_i32_1 = arith.constant 0 : i32
    return %c0_i32, %c0_i32_0 : i32, i32
  }
  func.func @transform_3(%arg0: i32) -> (i32, i32) {
    %c0_i32 = arith.constant 0 : i32
    %c0_i32_0 = arith.constant 0 : i32
    %c0_i32_1 = arith.constant 0 : i32
    return %c0_i32, %c0_i32_0 : i32, i32
  }
  func.func @transform_4(%arg0: i32) -> (i32, i32) {
    %c0_i32 = arith.constant 0 : i32
    %c0_i32_0 = arith.constant 0 : i32
    %c0_i32_1 = arith.constant 0 : i32
    return %c0_i32, %c0_i32_0 : i32, i32
  }
  func.func @transform_5(%arg0: i32) -> (i32, i32) {
    %c0_i32 = arith.constant 0 : i32
    %c0_i32_0 = arith.constant 0 : i32
    %c0_i32_1 = arith.constant 0 : i32
    return %c0_i32, %c0_i32_0 : i32, i32
  }
  func.func @transform_6(%arg0: i32) -> (i32, i32) {
    %c0_i32 = arith.constant 0 : i32
    %c0_i32_0 = arith.constant 0 : i32
    %c0_i32_1 = arith.constant 0 : i32
    return %c0_i32, %c0_i32_0 : i32, i32
  }
  func.func @transform_7(%arg0: i32) -> (i32, i32) {
    %c0_i32 = arith.constant 0 : i32
    %c0_i32_0 = arith.constant 0 : i32
    %c0_i32_1 = arith.constant 0 : i32
    return %c0_i32, %c0_i32_0 : i32, i32
  }
  func.func @transform_8(%arg0: i32) -> (i32, i32) {
    %c0_i32 = arith.constant 0 : i32
    %c0_i32_0 = arith.constant 0 : i32
    %c0_i32_1 = arith.constant 0 : i32
    return %c0_i32, %c0_i32_0 : i32, i32
  }
  func.func @transform_9(%arg0: i32) -> (i32, i32) {
    %c0_i32 = arith.constant 0 : i32
    %c0_i32_0 = arith.constant 0 : i32
    %c0_i32_1 = arith.constant 0 : i32
    return %c0_i32, %c0_i32_0 : i32, i32
  }
  func.func @transform_10(%arg0: i32) -> (i32, i32) {
    %c0_i32 = arith.constant 0 : i32
    %c0_i32_0 = arith.constant 0 : i32
    %c0_i32_1 = arith.constant 0 : i32
    return %c0_i32, %c0_i32_0 : i32, i32
  }
  func.func @transform_11(%arg0: i32) -> (i32, i32) {
    %c0_i32 = arith.constant 0 : i32
    %c0_i32_0 = arith.constant 0 : i32
    %c0_i32_1 = arith.constant 0 : i32
    return %c0_i32, %c0_i32_0 : i32, i32
  }
  func.func @transform_12(%arg0: i32) -> (i32, i32, i32) {
    %c0_i32 = arith.constant 0 : i32
    %c0_i32_0 = arith.constant 0 : i32
    %c0_i32_1 = arith.constant 0 : i32
    return %arg0, %c0_i32, %c0_i32_0 : i32, i32, i32
  }
}

</mosaic_0001>

<bundles_post_ra>
// kernel: tpu_custom_call.1
= control target key start
LH: loop header
LB: loop body
LE: loop exit
PB: predicated region body
PF: predicated region fallthrough
CT: control target
= control target key end

     0   :  { %vm58_vm0 = vcmask 261120   ;;  %s1511_s0 = inlined_call_operand.vmem [shape: bf16[2,16,32], index: 0, kind: input, shape index: {}]   ;;  %s1512_s1 = inlined_call_operand.vmem [shape: f32[2,1,64], index: 1, kind: input, shape index: {}]   ;;  %s1513_s2 = inlined_call_operand.vmem [shape: f32[1,32], index: 2, kind: input, shape index: {}]   ;;  %s1514_s3 = inlined_call_operand.vmem [shape: f32[1,32], index: 3, kind: input, shape index: {}]   ;;  %s1515_s4 = inlined_call_operand.vmem [shape: bf16[32,32], index: 4, kind: input, shape index: {}]   ;;  %s1516_s5 = inlined_call_operand.vmem [shape: bf16[96,64], index: 5, kind: input, shape index: {}]   ;;  %s1517_s6 = inlined_call_operand.vmem [shape: f32[1,64], index: 6, kind: input, shape index: {}]   ;;  %s1518_s7 = inlined_call_operand.vmem [shape: f32[1,64], index: 7, kind: input, shape index: {}]   ;;  %s1519_s8 = inlined_call_operand.vmem [shape: bf16[64,64], index: 8, kind: input, shape index: {}]   ;;  %s1520_s9 = inlined_call_operand.vmem [shape: bf16[192,64], index: 9, kind: input, shape index: {}]   ;;  %s1521_s10 = inlined_call_operand.vmem [shape: f32[1,64], index: 10, kind: input, shape index: {}]   ;;  %s1522_s11 = inlined_call_operand.vmem [shape: bf16[32,64], index: 11, kind: input, shape index: {}]   ;;  %s1523_s12 = inlined_call_operand.hbm [shape: bf16[2,16,64], index: 12, kind: output, shape index: {}]  }
   0x1   :  { %v1084_v0 = vld [vmem:[%s1515_s4 + $0x8] sm:$0xff]  ;;  %v1083_v1 = vld [vmem:[%s1515_s4] sm:$0xff] }
   0x2   :  { %v44_v2 = vld [vmem:[%s1511_s0] sm:$0xff]   ;;  %v46_v3 = vld [vmem:[%s1511_s0 + $0x8] sm:$0xff]   ;;  %107 = vmatpush.bf16.msra.mxu2 %v1084_v0  ;;  %164 = vmatpush.bf16.msra.mxu1 %v1084_v0 }
   0x3   :  { %v48_v4 = vunpack.c.l.bf16 %v44_v2  ;;  %v49_v5 = vunpack.c.h.bf16 %v44_v2  ;;  %v50_v6 = vunpack.c.l.bf16 %v46_v3  ;;  %v51_v7 = vunpack.c.h.bf16 %v46_v3 }
   0x5   :  { %v59_v8 = vsel %vm58_vm0, %v48_v4, 0.0  ;;  %v60_v9 = vsel %vm58_vm0, %v49_v5, 0.0 }
   0x6   :  { %17 = vsyncpa [#allocation3], 0  ;;  %v61_v10 = vadd.f32 %v60_v9, %v59_v8  ;;  %v68_v11 = vsel %vm58_vm0, %v50_v6, 0.0  ;;  %v69_v12 = vsel %vm58_vm0, %v51_v7, 0.0  ;;  %108 = vmatpush.bf16.msra.mxu2 %v1083_v1  ;;  %165 = vmatpush.bf16.msra.mxu1 %v1083_v1  ;;  %vm83_vm1 = vcmask 1041409   ;;  %s1198_s20 = smov 32  }
   0x7   :  { %v70_v13 = vadd.f32 %v69_v12, %v68_v11  ;;  %vm336_vm5 = vcmask 1047552   ;;  %vm337_vm6 = vsmask.f32 7424  ;;  %s1199_s21 = smov 64   ;;  %vm325_vm8 = vcmask 1040384   ;;  %s1200_s25 = smov [#allocation2]  }
   0x8   :  { %v62_v14 = vrot.slane %v61_v10, 4  ;;  %vm1337_vm7 = vmand %vm336_vm5, %vm337_vm6  ;;  %vm326_vm9 = vsmask.f32 256  ;;  %vm357_vm11 = vcmask 523264   ;;  %vm398_vm12 = vcmask 785408   ;;  %s1201_s26 = smov 4  }
   0x9   :  { %v71_v15 = vrot.slane %v70_v13, 4  ;;  %vm1353_vm10 = vmand %vm325_vm8, %vm326_vm9 }
   0xa   :  { %v63_v16 = vadd.f32 %v62_v14, %v61_v10 }
   0xb   :  { %v72_v17 = vadd.f32 %v71_v15, %v70_v13  ;;  %v56_v15 = vld [vmem:[%s1513_s2] sm:$0x1] }
   0xc   :  { %v64_v18 = vrot.slane %v63_v16, 2 }
   0xd   :  { %v73_v19 = vrot.slane %v72_v17, 2 }
   0xe   :  { %v65_v20 = vadd.f32 %v64_v18, %v63_v16 }
   0xf   :  { %v74_v21 = vadd.f32 %v73_v19, %v72_v17 }
  0x10   :  { %v66_v22 = vrot.slane %v65_v20, 1 }
  0x11   :  { %v75_v23 = vrot.slane %v74_v21, 1 }
  0x12   :  { %v67_v24 = vadd.f32 %v66_v22, %v65_v20  ;;  %v1114_v22 = vld [vmem:[%s1514_s3] ss:$0 sm:$0xff] }
  0x13   :  { %v76_v25 = vadd.f32 %v75_v23, %v74_v21 }
  0x14   :  { %v77_v26 = vpack.c.bf16 %v67_v24, %v67_v24 }
  0x15   :  { %v78_v27 = vpack.c.bf16 %v76_v25, %v76_v25 }
  0x16   :  { %v81_v28 = vunpack.c.l.b16 %v77_v26 }
  0x17   :  { %v82_v29 = vunpack.c.l.b16 %v78_v27 }
  0x19   :  { %v84_v30 = vsel %vm83_vm1, %v82_v29, %v81_v28 }
  0x1a   :  { %v85_v31 = vpack.c.b16 %v84_v30, %v84_v30 }
  0x1c   :  { %967 = vmatmul.msk.bf16.vlgmr.msra.gmra.mxu2 %vm58_vm0, %v85_v31 }
  0x9f   :  { %v110_v32 = vpop.f32.mrf.mxu2 }
  0xa0   :  { %v114_v33 = vmul.f32 0.0625, %v110_v32 }
  0xa2   :  { %v116_v34 = vrot.slane %v114_v33, 1  ;;  %v117_v35 = vperm.slane %v114_v33, 0 }
  0xa4   :  { %v118_v36 = vperm.slane %v116_v34, 0  ;;  %v121_v37 = vsub.f32 %v48_v4, %v117_v35  ;;  %v122_v38 = vsub.f32 %v49_v5, %v117_v35 }
  0xa6   :  { %v123_v39 = vsub.f32 %v50_v6, %v118_v36  ;;  %v124_v40 = vsub.f32 %v51_v7, %v118_v36  ;;  %v125_v41 = vmul.f32 %v121_v37, %v121_v37  ;;  %v126_v42 = vmul.f32 %v122_v38, %v122_v38 }
  0xa7   :  { %v112_v43 = vpop.f32.mrf.mxu2 }
  0xa8   :  { %v127_v44 = vmul.f32 %v123_v39, %v123_v39  ;;  %v128_v45 = vmul.f32 %v124_v40, %v124_v40  ;;  %v129_v46 = vsel %vm58_vm0, %v125_v41, 0.0  ;;  %v130_v47 = vsel %vm58_vm0, %v126_v42, 0.0 }
  0xa9   :  { %v131_v48 = vadd.f32 %v130_v47, %v129_v46 }
  0xaa   :  { %v138_v49 = vsel %vm58_vm0, %v127_v44, 0.0  ;;  %v139_v50 = vsel %vm58_vm0, %v128_v45, 0.0 }
  0xab   :  { %v132_v51 = vrot.slane %v131_v48, 4  ;;  %v140_v52 = vadd.f32 %v139_v50, %v138_v49 }
  0xad   :  { %v133_v53 = vadd.f32 %v132_v51, %v131_v48  ;;  %v141_v54 = vrot.slane %v140_v52, 4 }
  0xaf   :  { %v134_v55 = vrot.slane %v133_v53, 2  ;;  %v142_v56 = vadd.f32 %v141_v54, %v140_v52 }
  0xb1   :  { %v135_v57 = vadd.f32 %v134_v55, %v133_v53  ;;  %v143_v58 = vrot.slane %v142_v56, 2 }
  0xb3   :  { %v136_v59 = vrot.slane %v135_v57, 1  ;;  %v144_v60 = vadd.f32 %v143_v58, %v142_v56 }
  0xb5   :  { %v137_v61 = vadd.f32 %v136_v59, %v135_v57  ;;  %v145_v62 = vrot.slane %v144_v60, 1 }
  0xb7   :  { %v146_v63 = vadd.f32 %v145_v62, %v144_v60  ;;  %v147_v0 = vpack.c.bf16 %v137_v61, %v137_v61 }
  0xb9   :  { %v148_v1 = vpack.c.bf16 %v146_v63, %v146_v63  ;;  %v151_v2 = vunpack.c.l.b16 %v147_v0 }
  0xbb   :  { %v152_v3 = vunpack.c.l.b16 %v148_v1 }
  0xbd   :  { %v153_v4 = vsel %vm83_vm1, %v152_v3, %v151_v2 }
  0xbe   :  { %v154_v5 = vpack.c.b16 %v153_v4, %v153_v4 }
  0xc0   :  { %968 = vmatmul.msk.bf16.vlgmr.msra.gmra.mxu1 %vm58_vm0, %v154_v5 }
 0x13d   :  { %v167_v6 = vpop.f32.mrf.mxu1 }
 0x13e   :  { %v171_v7 = vmul.f32 0.0625, %v167_v6 }
 0x140   :  { %v172_v8 = vadd.f32 1e-06, %v171_v7 }
 0x142   :  { %1119 = vrsqrt.f32 %v172_v8  ;;  %vm179_vm3 = vweird.f32 %v172_v8 }
 0x145   :  { %v169_v9 = vpop.f32.mrf.mxu1 }
 0x148   :  { %v1120_v10 = vpop.eup %1119 }
 0x149   :  { %v174_v11 = vmul.f32 %v1120_v10, %v172_v8  ;;  %vm180_vm2 = vweird.f32 %v1120_v10 }
 0x14a   :  { %vm181_vm4 = vmor %vm179_vm3, %vm180_vm2 }
 0x14b   :  { %v175_v12 = vmul.f32 %v1120_v10, %v174_v11  ;;  %v1197_v11 = vmov 1065369472  }
 0x14d   :  { %v176_v13 = vmul.f32 0.5, %v175_v12  ;;  %v1309_v12 = vunpack.c.h.bf16 %v1197_v11 }
 0x14f   :  { %v177_v14 = vsub.f32 1.5, %v176_v13 }
 0x151   :  { %v178_v16 = vmul.f32 %v1120_v10, %v177_v14  ;;  %v1311_v14 = vunpack.c.l.bf16 %v1197_v11 }
 0x153   :  { %v182_v17 = vsel %vm181_vm4, %v1120_v10, %v178_v16 }
 0x154   :  { %v184_v18 = vrot.slane %v182_v17, 1  ;;  %v186_v19 = vmul.f32 %v182_v17, %v56_v15  ;;  %v1089_v17 = vld [vmem:[%s1516_s5 + $0x20] sm:$0xff] }
 0x156   :  { %v187_v20 = vmul.f32 %v184_v18, %v56_v15  ;;  %v190_v21 = vperm.slane %v186_v19, 0  ;;  %v1090_v15 = vld [vmem:[%s1516_s5 + $0x28] sm:$0xff] }
 0x157   :  { %405 = vmatpush.bf16.msrb.mxu2 %v1090_v15  ;;  %v1085_v15 = vld [vmem:[%s1516_s5] sm:$0xff] }
 0x158   :  { %v191_v23 = vperm.slane %v187_v20, 0  ;;  %v194_v24 = vmul.f32 %v190_v21, %v121_v37  ;;  %v195_v25 = vmul.f32 %v190_v21, %v122_v38 }
 0x15a   :  { %v201_v26 = vadd.f32 %v1114_v22, %v194_v24  ;;  %v202_v27 = vadd.f32 %v1114_v22, %v195_v25  ;;  %v196_v28 = vmul.f32 %v191_v23, %v123_v39  ;;  %v197_v29 = vmul.f32 %v191_v23, %v124_v40 }
 0x15b   :  { %406 = vmatpush.bf16.msrb.mxu2 %v1089_v17 }
 0x15c   :  { %v1297_v30 = vpack.c.bf16 %v201_v26, %v201_v26  ;;  %v1299_v31 = vpack.c.bf16 %v202_v27, %v202_v27  ;;  %v203_v32 = vadd.f32 %v1114_v22, %v196_v28  ;;  %v204_v33 = vadd.f32 %v1114_v22, %v197_v29  ;;  %v1088_v27 = vld [vmem:[%s1516_s5 + $0x18] sm:$0xff] }
 0x15e   :  { %v209_v34 = vxor.u32 2147516416, %v1297_v30  ;;  %v210_v35 = vxor.u32 2147516416, %v1299_v31  ;;  %v1303_v36 = vpack.c.bf16 %v203_v32, %v203_v32  ;;  %v1305_v41 = vpack.c.bf16 %v204_v33, %v204_v33 }
 0x15f   :  { %407 = vmatpush.bf16.msrb.mxu2 %v1088_v27 }
 0x160   :  { %v213_v37 = vunpack.c.l.bf16 %v209_v34  ;;  %v214_v38 = vunpack.c.l.bf16 %v210_v35  ;;  %v211_v42 = vxor.u32 2147516416, %v1303_v36  ;;  %v212_v39 = vxor.u32 2147516416, %v1305_v41 }
 0x161   :  { %v271_v34 = vunpack.c.l.bf16 %v1297_v30  ;;  %v273_v30 = vunpack.c.l.bf16 %v1303_v36 }
 0x162   :  { %v217_v40 = vmul.f32 1.442695, %v213_v37  ;;  %v219_v43 = vmul.f32 1.442695, %v214_v38  ;;  %v215_v44 = vunpack.c.l.bf16 %v211_v42  ;;  %v216_v45 = vunpack.c.l.bf16 %v212_v39 }
 0x163   :  { %v272_v42 = vunpack.c.l.bf16 %v1299_v31  ;;  %v274_v31 = vunpack.c.l.bf16 %v1305_v41 }
 0x164   :  { %1121 = vpow2.f32 %v217_v40  ;;  %v221_v46 = vmul.f32 1.442695, %v215_v44  ;;  %v223_v47 = vmul.f32 1.442695, %v216_v45 }
 0x165   :  { %1123 = vpow2.f32 %v219_v43 }
 0x166   :  { %1125 = vpow2.f32 %v221_v46  ;;  %v1087_v46 = vld [vmem:[%s1516_s5 + $0x10] sm:$0xff] }
 0x167   :  { %1127 = vpow2.f32 %v223_v47  ;;  %408 = vmatpush.bf16.msrb.mxu2 %v1087_v46 }
 0x16a   :  { %v1122_v48 = vpop.eup %1121 }
 0x16b   :  { %v1124_v49 = vpop.eup %1123  ;;  %v225_v50 = vpack.c.bf16 %v1122_v48, %v1122_v48 }
 0x16c   :  { %v226_v51 = vpack.c.bf16 %v1124_v49, %v1124_v49  ;;  %v1126_v52 = vpop.eup %1125 }
 0x16d   :  { %v229_v53 = vunpack.c.l.bf16 %v225_v50  ;;  %v1128_v54 = vpop.eup %1127  ;;  %v227_v56 = vpack.c.bf16 %v1126_v52, %v1126_v52 }
 0x16e   :  { %v230_v55 = vunpack.c.l.bf16 %v226_v51  ;;  %v228_v58 = vpack.c.bf16 %v1128_v54, %v1128_v54 }
 0x16f   :  { %v233_v57 = vadd.f32 1.0, %v229_v53  ;;  %v231_v60 = vunpack.c.l.bf16 %v227_v56 }
 0x170   :  { %v234_v59 = vadd.f32 1.0, %v230_v55  ;;  %v232_v62 = vunpack.c.l.bf16 %v228_v58 }
 0x171   :  { %v237_v61 = vpack.c.bf16 %v233_v57, %v233_v57  ;;  %v235_v0 = vadd.f32 1.0, %v231_v60 }
 0x172   :  { %v238_v63 = vpack.c.bf16 %v234_v59, %v234_v59  ;;  %v236_v3 = vadd.f32 1.0, %v232_v62 }
 0x173   :  { %v243_v1 = vunpack.c.h.bf16 %v237_v61  ;;  %v244_v2 = vunpack.c.l.bf16 %v237_v61  ;;  %v239_v6 = vpack.c.bf16 %v235_v0, %v235_v0 }
 0x174   :  { %v250_v4 = vunpack.c.h.bf16 %v238_v63  ;;  %v251_v5 = vunpack.c.l.bf16 %v238_v63  ;;  %v240_v7 = vpack.c.bf16 %v236_v3, %v236_v3 }
 0x175   :  { %1129 = vrcp.f32 %v243_v1  ;;  %v257_v8 = vunpack.c.h.bf16 %v239_v6  ;;  %v258_v9 = vunpack.c.l.bf16 %v239_v6 }
 0x176   :  { %1131 = vrcp.f32 %v244_v2  ;;  %v264_v10 = vunpack.c.h.bf16 %v240_v7  ;;  %v265_v13 = vunpack.c.l.bf16 %v240_v7 }
 0x177   :  { %1133 = vrcp.f32 %v250_v4 }
 0x178   :  { %1135 = vrcp.f32 %v251_v5 }
 0x179   :  { %1137 = vrcp.f32 %v257_v8 }
 0x17a   :  { %1139 = vrcp.f32 %v258_v9 }
 0x17b   :  { %v1130_v16 = vpop.eup %1129  ;;  %1141 = vrcp.f32 %v264_v10 }
 0x17c   :  { %v1132_v18 = vpop.eup %1131  ;;  %v246_v19 = vmul.f32 %v1130_v16, %v1309_v12  ;;  %1143 = vrcp.f32 %v265_v13  ;;  %v1086_v13 = vld [vmem:[%s1516_s5 + $0x8] sm:$0xff]  ;;  %s945_s5 = sshll.u32 %s1200_s25, 4  ;;  %s946_s5 = int_to_ptr.vmem [resolvable:$true] %s945_s5 }
 0x17d   :  { %v1134_v20 = vpop.eup %1133  ;;  %v248_v21 = vmul.f32 %v1132_v18, %v1311_v14  ;;  %409 = vmatpush.bf16.msrb.mxu2 %v1086_v13 }
 0x17e   :  { %v1136_v22 = vpop.eup %1135  ;;  %v253_v23 = vmul.f32 %v1134_v20, %v1309_v12 }
 0x17f   :  { %v1138_v24 = vpop.eup %1137  ;;  %v249_v25 = vpack.c.bf16 %v246_v19, %v248_v21  ;;  %v255_v26 = vmul.f32 %v1136_v22, %v1311_v14 }
 0x180   :  { %v1140_v28 = vpop.eup %1139  ;;  %v260_v29 = vmul.f32 %v1138_v24, %v1309_v12 }
 0x181   :  { %v1142_v32 = vpop.eup %1141  ;;  %v256_v33 = vpack.c.bf16 %v253_v23, %v255_v26  ;;  %v275_v35 = vunpack.c.l.bf16 %v249_v25  ;;  %v262_v37 = vmul.f32 %v1140_v28, %v1311_v14  ;;  %410 = vmatpush.bf16.msrb.mxu2 %v1085_v15  ;;  %v1094_v28 = vld [vmem:[%s1519_s8 + $0x18] sm:$0xff] }
 0x182   :  { %v1144_v38 = vpop.eup %1143  ;;  %v267_v39 = vmul.f32 %v1142_v32, %v1309_v12  ;;  %501 = vmatpush.bf16.msra.mxu3 %v1094_v28  ;;  %558 = vmatpush.bf16.msra.mxu0 %v1094_v28  ;;  %v1093_v32 = vld [vmem:[%s1519_s8 + $0x10] sm:$0xff] }
 0x183   :  { %v276_v40 = vunpack.c.l.bf16 %v256_v33  ;;  %v279_v43 = vmul.f32 %v275_v35, %v271_v34  ;;  %v263_v44 = vpack.c.bf16 %v260_v29, %v262_v37  ;;  %v269_v45 = vmul.f32 %v1144_v38, %v1311_v14  ;;  %v1115_v29 = vld [vmem:[%s1512_s1] ss:$0 sm:$0xff]  ;;  %v1092_v35 = vld [vmem:[%s1519_s8 + $0x8] sm:$0xff] }
 0x185   :  { %v280_v47 = vmul.f32 %v276_v40, %v272_v42  ;;  %v283_v48 = vpack.c.bf16 %v279_v43, %v279_v43  ;;  %v270_v49 = vpack.c.bf16 %v267_v39, %v269_v45  ;;  %v277_v50 = vunpack.c.l.bf16 %v263_v44  ;;  %v1091_v40 = vld [vmem:[%s1519_s8] sm:$0xff] }
 0x186   :  { %502 = vmatpush.bf16.msra.mxu3 %v1093_v32  ;;  %559 = vmatpush.bf16.msra.mxu0 %v1093_v32  ;;  %v1116_v45 = vld [vmem:[%s1512_s1 + $0x1] ss:$0 sm:$0xff] }
 0x187   :  { %v284_v51 = vpack.c.bf16 %v280_v47, %v280_v47  ;;  %v303_v52 = vunpack.c.l.b16 %v283_v48  ;;  %v278_v53 = vunpack.c.l.bf16 %v270_v49  ;;  %v281_v54 = vmul.f32 %v277_v50, %v273_v30 }
 0x189   :  { %v304_v55 = vunpack.c.l.b16 %v284_v51  ;;  %v282_v56 = vmul.f32 %v278_v53, %v274_v31  ;;  %v285_v57 = vpack.c.bf16 %v281_v54, %v281_v54 }
 0x18a   :  { %503 = vmatpush.bf16.msra.mxu3 %v1092_v35  ;;  %560 = vmatpush.bf16.msra.mxu0 %v1092_v35 }
 0x18b   :  { %v307_v58 = vpack.c.b16 %v304_v55, %v303_v52  ;;  %v286_v59 = vpack.c.bf16 %v282_v56, %v282_v56  ;;  %v305_v60 = vunpack.c.l.b16 %v285_v57 }
 0x18d   :  { %341 = vrot.lane.b32.xlu0 %v307_v58, %s1198_s20  ;;  %v306_v36 = vunpack.c.l.b16 %v286_v59  ;;  %v310_v61 = vshrl.u32 %v307_v58, 16  ;;  %v313_v62 = vshll.u32 %v307_v58, 16 }
 0x18e   :  { %504 = vmatpush.bf16.msra.mxu3 %v1091_v40  ;;  %561 = vmatpush.bf16.msra.mxu0 %v1091_v40 }
 0x18f   :  { %v308_v63 = vpack.c.b16 %v306_v36, %v305_v60  ;;  %v330_v41 = vrot.slane %v313_v62, 1  ;;  %v312_v0 = vrot.slane %v310_v61, 7 }
 0x191   :  { %343 = vrot.lane.b32.xlu1 %v308_v63, %s1198_s20  ;;  %v331_v2 = vor.u32 %v330_v41, %v310_v61  ;;  %v317_v3 = vshrl.u32 %v308_v63, 16  ;;  %v320_v4 = vshll.u32 %v308_v63, 16  ;;  %v315_v5 = vor.u32 %v313_v62, %v312_v0 }
 0x193   :  { %v339_v6 = vsel %vm1337_vm7, %v331_v2, 0  ;;  %v332_v7 = vrot.slane %v320_v4, 1  ;;  %v319_v8 = vrot.slane %v317_v3, 7  ;;  %v328_v18 = vsel %vm1353_vm10, 0, %v315_v5 }
 0x195   :  { %347 = vrot.lane.b32.xlu0 %v339_v6, %s1199_s21  ;;  %v333_v9 = vor.u32 %v332_v7, %v317_v3  ;;  %v322_v10 = vor.u32 %v320_v4, %v319_v8 }
 0x197   :  { %v340_v11 = vsel %vm1337_vm7, %v333_v9, 0  ;;  %v329_v24 = vsel %vm1353_vm10, 0, %v322_v10 }
 0x199   :  { %349 = vrot.lane.b32.xlu1 %v340_v11, %s1199_s21 }
 0x1ff   :  { %v342_v16 = vpop.permute.xlu0 %341 }
 0x200   :  { %v353_v19 = vsel %vm58_vm0, %v328_v18, %v342_v16 }
 0x203   :  { %v344_v22 = vpop.permute.xlu1 %343 }
 0x204   :  { %v356_v25 = vsel %vm58_vm0, %v329_v24, %v344_v22 }
 0x207   :  { %v348_v20 = vpop.permute.xlu0 %347 }
 0x208   :  { %v359_v21 = vsel %vm357_vm11, %v353_v19, %v348_v20 }
 0x209   :  { %993 = vmatmul.msk.bf16.vlgmr.msrb.gmra.mxu2 %vm398_vm12, %v359_v21 }
 0x20b   :  { %v350_v23 = vpop.permute.xlu1 %349 }
 0x20c   :  { %v361_v26 = vsel %vm357_vm11, %v356_v25, %v350_v23 }
 0x219   :  { %994 = vmatmul.msk.bf16.gmra.mxu2 %vm398_vm12, %v361_v26 }
 0x28c   :  { %v412_v27 = vpop.f32.mrf.mxu2 }
 0x28d   :  { %v430_v33 = vadd.f32 %v1115_v29, %v412_v27 }
 0x28f   :  { %v444_v38 = vsel %vm357_vm11, %v430_v33, 0.0 }
 0x294   :  { %v414_v34 = vpop.f32.mrf.mxu2 }
 0x295   :  { %v431_v37 = vadd.f32 %v1115_v29, %v414_v34 }
 0x297   :  { %v445_v42 = vsel %vm357_vm11, %v431_v37, 0.0 }
 0x298   :  { %v446_v39 = vadd.f32 %v445_v42, %v444_v38 }
 0x29a   :  { %v447_v43 = vrot.slane %v446_v39, 4 }
 0x29c   :  { %v417_v44 = vpop.f32.mrf.mxu2  ;;  %v448_v46 = vadd.f32 %v447_v43, %v446_v39 }
 0x29d   :  { %v432_v30 = vadd.f32 %v1116_v45, %v417_v44 }
 0x29e   :  { %v449_v47 = vrot.slane %v448_v46, 2 }
 0x29f   :  { %v453_v50 = vsel %vm357_vm11, %v432_v30, 0.0 }
 0x2a0   :  { %v450_v51 = vadd.f32 %v449_v47, %v448_v46  ;;  %v1105_v47 = vld [vmem:[%s1520_s9 + $0x50] sm:$0xff] }
 0x2a2   :  { %v451_v54 = vrot.slane %v450_v51, 1 }
 0x2a4   :  { %v419_v48 = vpop.f32.mrf.mxu2  ;;  %v452_v57 = vadd.f32 %v451_v54, %v450_v51 }
 0x2a5   :  { %v433_v49 = vadd.f32 %v1116_v45, %v419_v48 }
 0x2a6   :  { %v462_v36 = vpack.c.bf16 %v452_v57, %v452_v57  ;;  %v442_v57 = vld [vmem:[%s1517_s6] sm:$0x1] }
 0x2a7   :  { %v454_v31 = vsel %vm357_vm11, %v433_v49, 0.0 }
 0x2a8   :  { %v455_v52 = vadd.f32 %v454_v31, %v453_v50  ;;  %v466_v62 = vunpack.c.l.b16 %v462_v36  ;;  %v1104_v50 = vld [vmem:[%s1520_s9 + $0x48] sm:$0xff] }
 0x2aa   :  { %v456_v53 = vrot.slane %v455_v52, 4 }
 0x2ac   :  { %v457_v55 = vadd.f32 %v456_v53, %v455_v52 }
 0x2ae   :  { %v458_v56 = vrot.slane %v457_v55, 2 }
 0x2b0   :  { %v459_v58 = vadd.f32 %v458_v56, %v457_v55 }
 0x2b2   :  { %v460_v59 = vrot.slane %v459_v58, 1 }
 0x2b4   :  { %v461_v60 = vadd.f32 %v460_v59, %v459_v58 }
 0x2b6   :  { %v463_v61 = vpack.c.bf16 %v461_v60, %v461_v60 }
 0x2b8   :  { %v467_v63 = vunpack.c.l.b16 %v463_v61 }
 0x2ba   :  { %v468_v41 = vsel %vm83_vm1, %v467_v63, %v466_v62  ;;  %v1117_v63 = vld [vmem:[%s1518_s7] ss:$0 sm:$0xff]  ;;  %s947_s7 = sshll.u32 %s1523_s12, 4  ;;  %s948_s7 = int_to_ptr.hbm [resolvable:$true] %s947_s7 }
 0x2bb   :  { %v469_v0 = vpack.c.b16 %v468_v41, %v468_v41 }
 0x2bd   :  { %1011 = vmatmul.msk.bf16.vlgmr.msra.gmra.mxu3 %vm357_vm11, %v469_v0 }
 0x340   :  { %v506_v2 = vpop.f32.mrf.mxu3 }
 0x341   :  { %v510_v3 = vmul.f32 0.03125, %v506_v2 }
 0x343   :  { %v512_v4 = vrot.slane %v510_v3, 1  ;;  %v513_v5 = vperm.slane %v510_v3, 0 }
 0x345   :  { %v514_v6 = vperm.slane %v512_v4, 0  ;;  %v517_v7 = vsub.f32 %v430_v33, %v513_v5  ;;  %v518_v8 = vsub.f32 %v431_v37, %v513_v5 }
 0x347   :  { %v1389_v9 = vsub.f32 %v432_v30, %v514_v6  ;;  %v1391_v10 = vsub.f32 %v433_v49, %v514_v6  ;;  %v521_v11 = vmul.f32 %v517_v7, %v517_v7  ;;  %v522_v13 = vmul.f32 %v518_v8, %v518_v8  ;;  %v1106_v30 = vld [vmem:[%s1520_s9 + $0x58] sm:$0xff] }
 0x348   :  { %v508_v15 = vpop.f32.mrf.mxu3  ;;  %854 = vmatpush.bf16.msrb.mxu3 %v1106_v30 }
 0x349   :  { %v523_v16 = vmul.f32 %v1389_v9, %v1389_v9  ;;  %v524_v18 = vmul.f32 %v1391_v10, %v1391_v10  ;;  %v525_v19 = vsel %vm357_vm11, %v521_v11, 0.0  ;;  %v526_v20 = vsel %vm357_vm11, %v522_v13, 0.0 }
 0x34a   :  { %v527_v21 = vadd.f32 %v526_v20, %v525_v19 }
 0x34b   :  { %v534_v22 = vsel %vm357_vm11, %v523_v16, 0.0  ;;  %v535_v23 = vsel %vm357_vm11, %v524_v18, 0.0 }
 0x34c   :  { %v528_v24 = vrot.slane %v527_v21, 4  ;;  %v536_v25 = vadd.f32 %v535_v23, %v534_v22  ;;  %855 = vmatpush.bf16.msrb.mxu3 %v1105_v47 }
 0x34e   :  { %v529_v26 = vadd.f32 %v528_v24, %v527_v21  ;;  %v537_v27 = vrot.slane %v536_v25, 4 }
 0x350   :  { %v530_v28 = vrot.slane %v529_v26, 2  ;;  %v538_v29 = vadd.f32 %v537_v27, %v536_v25  ;;  %856 = vmatpush.bf16.msrb.mxu3 %v1104_v50 }
 0x352   :  { %v531_v32 = vadd.f32 %v530_v28, %v529_v26  ;;  %v539_v33 = vrot.slane %v538_v29, 2 }
 0x354   :  { %v532_v34 = vrot.slane %v531_v32, 1  ;;  %v540_v35 = vadd.f32 %v539_v33, %v538_v29 }
 0x356   :  { %v533_v37 = vadd.f32 %v532_v34, %v531_v32  ;;  %v541_v38 = vrot.slane %v540_v35, 1 }
 0x358   :  { %v542_v42 = vadd.f32 %v541_v38, %v540_v35  ;;  %v543_v39 = vpack.c.bf16 %v533_v37, %v533_v37  ;;  %v1103_v37 = vld [vmem:[%s1520_s9 + $0x40] sm:$0xff] }
 0x359   :  { %857 = vmatpush.bf16.msrb.mxu3 %v1103_v37 }
 0x35a   :  { %v544_v40 = vpack.c.bf16 %v542_v42, %v542_v42  ;;  %v547_v43 = vunpack.c.l.b16 %v543_v39 }
 0x35c   :  { %v548_v44 = vunpack.c.l.b16 %v544_v40 }
 0x35e   :  { %v549_v45 = vsel %vm83_vm1, %v548_v44, %v547_v43 }
 0x35f   :  { %v550_v46 = vpack.c.b16 %v549_v45, %v549_v45 }
 0x361   :  { %1012 = vmatmul.msk.bf16.vlgmr.msra.gmra.mxu0 %vm357_vm11, %v550_v46 }
 0x3de   :  { %v563_v48 = vpop.f32.mrf.mxu0 }
 0x3df   :  { %v567_v49 = vmul.f32 0.03125, %v563_v48 }
 0x3e1   :  { %v568_v31 = vadd.f32 1e-06, %v567_v49 }
 0x3e3   :  { %1145 = vrsqrt.f32 %v568_v31  ;;  %vm575_vm14 = vweird.f32 %v568_v31 }
 0x3e6   :  { %v565_v51 = vpop.f32.mrf.mxu0 }
 0x3e9   :  { %v1146_v52 = vpop.eup %1145 }
 0x3ea   :  { %v570_v53 = vmul.f32 %v1146_v52, %v568_v31  ;;  %vm576_vm13 = vweird.f32 %v1146_v52 }
 0x3eb   :  { %vm577_vm15 = vmor %vm575_vm14, %vm576_vm13 }
 0x3ec   :  { %v571_v54 = vmul.f32 %v1146_v52, %v570_v53 }
 0x3ee   :  { %v572_v55 = vmul.f32 0.5, %v571_v54 }
 0x3f0   :  { %v573_v56 = vsub.f32 1.5, %v572_v55 }
 0x3f2   :  { %v574_v58 = vmul.f32 %v1146_v52, %v573_v56 }
 0x3f4   :  { %v578_v59 = vsel %vm577_vm15, %v1146_v52, %v574_v58 }
 0x3f5   :  { %v580_v60 = vrot.slane %v578_v59, 1  ;;  %v582_v36 = vmul.f32 %v578_v59, %v442_v57 }
 0x3f7   :  { %v583_v61 = vmul.f32 %v580_v60, %v442_v57  ;;  %v586_v62 = vperm.slane %v582_v36, 0 }
 0x3f9   :  { %v587_v41 = vperm.slane %v583_v61, 0  ;;  %v590_v0 = vmul.f32 %v586_v62, %v517_v7  ;;  %v591_v2 = vmul.f32 %v586_v62, %v518_v8 }
 0x3fb   :  { %v597_v3 = vadd.f32 %v1117_v63, %v590_v0  ;;  %v598_v4 = vadd.f32 %v1117_v63, %v591_v2  ;;  %v592_v5 = vmul.f32 %v587_v41, %v1389_v9  ;;  %v593_v6 = vmul.f32 %v587_v41, %v1391_v10 }
 0x3fd   :  { %v1420_v11 = vpack.c.bf16 %v597_v3, %v597_v3  ;;  %v1422_v13 = vpack.c.bf16 %v598_v4, %v598_v4  ;;  %v599_v15 = vadd.f32 %v1117_v63, %v592_v5  ;;  %v600_v16 = vadd.f32 %v1117_v63, %v593_v6 }
 0x3ff   :  { %v605_v18 = vxor.u32 2147516416, %v1420_v11  ;;  %v606_v19 = vxor.u32 2147516416, %v1422_v13  ;;  %v1426_v20 = vpack.c.bf16 %v599_v15, %v599_v15  ;;  %v1428_v7 = vpack.c.bf16 %v600_v16, %v600_v16 }
 0x400   :  { %v665_v16 = vunpack.c.l.bf16 %v1420_v11 }
 0x401   :  { %v609_v8 = vunpack.c.l.bf16 %v605_v18  ;;  %v610_v21 = vunpack.c.l.bf16 %v606_v19  ;;  %v607_v9 = vxor.u32 2147516416, %v1426_v20  ;;  %v608_v10 = vxor.u32 2147516416, %v1428_v7 }
 0x403   :  { %v613_v22 = vmul.f32 1.442695, %v609_v8  ;;  %v615_v23 = vmul.f32 1.442695, %v610_v21  ;;  %v611_v24 = vunpack.c.l.bf16 %v607_v9  ;;  %v612_v25 = vunpack.c.l.bf16 %v608_v10 }
 0x404   :  { %v666_v21 = vunpack.c.l.bf16 %v1422_v13  ;;  %v1108_v13 = vld [vmem:[%s1522_s11 + $0x8] sm:$0xff] }
 0x405   :  { %1147 = vpow2.f32 %v613_v22  ;;  %v617_v26 = vmul.f32 1.442695, %v611_v24  ;;  %v619_v27 = vmul.f32 1.442695, %v612_v25  ;;  %v667_v25 = vunpack.c.l.bf16 %v1426_v20  ;;  %915 = vmatpush.bf16.msrb.mxu0 %v1108_v13 }
 0x406   :  { %1149 = vpow2.f32 %v615_v23 }
 0x407   :  { %1151 = vpow2.f32 %v617_v26  ;;  %v1102_v26 = vld [vmem:[%s1520_s9 + $0x38] sm:$0xff] }
 0x408   :  { %1153 = vpow2.f32 %v619_v27  ;;  %831 = vmatpush.bf16.msrb.mxu1 %v1102_v26 }
 0x40b   :  { %v1148_v28 = vpop.eup %1147 }
 0x40c   :  { %v1150_v29 = vpop.eup %1149  ;;  %v621_v32 = vpack.c.bf16 %v1148_v28, %v1148_v28 }
 0x40d   :  { %v622_v33 = vpack.c.bf16 %v1150_v29, %v1150_v29  ;;  %v1152_v34 = vpop.eup %1151 }
 0x40e   :  { %v625_v35 = vunpack.c.l.bf16 %v621_v32  ;;  %v1154_v38 = vpop.eup %1153  ;;  %v623_v39 = vpack.c.bf16 %v1152_v34, %v1152_v34 }
 0x40f   :  { %v626_v42 = vunpack.c.l.bf16 %v622_v33  ;;  %v624_v43 = vpack.c.bf16 %v1154_v38, %v1154_v38 }
 0x410   :  { %v629_v40 = vadd.f32 1.0, %v625_v35  ;;  %v627_v45 = vunpack.c.l.bf16 %v623_v39  ;;  %v1107_v35 = vld [vmem:[%s1522_s11] sm:$0xff] }
 0x411   :  { %v630_v44 = vadd.f32 1.0, %v626_v42  ;;  %v628_v30 = vunpack.c.l.bf16 %v624_v43  ;;  %v1081_v39 = vld [vmem:[%s1511_s0] sm:$0xff]  ;;  %916 = vmatpush.bf16.msrb.mxu0 %v1107_v35 }
 0x412   :  { %v633_v46 = vpack.c.bf16 %v629_v40, %v629_v40  ;;  %v631_v48 = vadd.f32 1.0, %v627_v45 }
 0x413   :  { %v634_v47 = vpack.c.bf16 %v630_v44, %v630_v44  ;;  %v632_v31 = vadd.f32 1.0, %v628_v30 }
 0x414   :  { %v637_v49 = vunpack.c.h.bf16 %v633_v46  ;;  %v638_v50 = vunpack.c.l.bf16 %v633_v46  ;;  %v635_v53 = vpack.c.bf16 %v631_v48, %v631_v48  ;;  %1079 = vmatmul.msk.bf16.vlgmr.msrb.gmra.mxu0 %vm58_vm0, %v1081_v39 }
 0x415   :  { %v644_v51 = vunpack.c.h.bf16 %v634_v47  ;;  %v645_v52 = vunpack.c.l.bf16 %v634_v47  ;;  %v636_v54 = vpack.c.bf16 %v632_v31, %v632_v31  ;;  %v1099_v47 = vld [vmem:[%s1520_s9 + $0x20] sm:$0xff] }
 0x416   :  { %1155 = vrcp.f32 %v637_v49  ;;  %v651_v55 = vunpack.c.h.bf16 %v635_v53  ;;  %v652_v56 = vunpack.c.l.bf16 %v635_v53  ;;  %v1098_v53 = vld [vmem:[%s1520_s9 + $0x18] sm:$0xff] }
 0x417   :  { %1157 = vrcp.f32 %v638_v50  ;;  %v658_v57 = vunpack.c.h.bf16 %v636_v54  ;;  %v659_v58 = vunpack.c.l.bf16 %v636_v54 }
 0x418   :  { %1159 = vrcp.f32 %v644_v51 }
 0x419   :  { %1161 = vrcp.f32 %v645_v52 }
 0x41a   :  { %1163 = vrcp.f32 %v651_v55 }
 0x41b   :  { %1165 = vrcp.f32 %v652_v56 }
 0x41c   :  { %v1156_v59 = vpop.eup %1155  ;;  %1167 = vrcp.f32 %v658_v57 }
 0x41d   :  { %v1158_v60 = vpop.eup %1157  ;;  %v640_v36 = vmul.f32 %v1156_v59, %v1309_v12  ;;  %1169 = vrcp.f32 %v659_v58  ;;  %v1097_v58 = vld [vmem:[%s1520_s9 + $0x10] sm:$0xff]  ;;  %v1096_v59 = vld [vmem:[%s1520_s9 + $0x8] sm:$0xff] }
 0x41e   :  { %v1160_v61 = vpop.eup %1159  ;;  %v642_v62 = vmul.f32 %v1158_v60, %v1311_v14 }
 0x41f   :  { %v1162_v63 = vpop.eup %1161  ;;  %v647_v41 = vmul.f32 %v1160_v61, %v1309_v12 }
 0x420   :  { %v1164_v0 = vpop.eup %1163  ;;  %v643_v2 = vpack.c.bf16 %v640_v36, %v642_v62  ;;  %v649_v3 = vmul.f32 %v1162_v63, %v1311_v14  ;;  %v1095_v36 = vld [vmem:[%s1520_s9] sm:$0xff]  ;;  %v1082_v63 = vld [vmem:[%s1511_s0 + $0x8] sm:$0xff] }
 0x421   :  { %v1166_v4 = vpop.eup %1165  ;;  %v654_v5 = vmul.f32 %v1164_v0, %v1309_v12 }
 0x422   :  { %v1168_v6 = vpop.eup %1167  ;;  %v650_v15 = vpack.c.bf16 %v647_v41, %v649_v3  ;;  %v669_v18 = vunpack.c.l.bf16 %v643_v2  ;;  %v656_v19 = vmul.f32 %v1166_v4, %v1311_v14 }
 0x423   :  { %v1170_v8 = vpop.eup %1169  ;;  %v661_v9 = vmul.f32 %v1168_v6, %v1309_v12  ;;  %v668_v12 = vunpack.c.l.bf16 %v1428_v7  ;;  %v1100_v7 = vld [vmem:[%s1520_s9 + $0x28] sm:$0xff] }
 0x424   :  { %v670_v10 = vunpack.c.l.bf16 %v650_v15  ;;  %v673_v22 = vmul.f32 %v669_v18, %v665_v16  ;;  %v657_v23 = vpack.c.bf16 %v654_v5, %v656_v19  ;;  %v663_v24 = vmul.f32 %v1170_v8, %v1311_v14  ;;  %v1101_v14 = vld [vmem:[%s1520_s9 + $0x30] sm:$0xff]  ;;  %1080 = vmatmul.msk.bf16.gmra.mxu0 %vm58_vm0, %v1082_v63  ;;  %v1118_v15 = vld [vmem:[%s1521_s10] ss:$0 sm:$0xff] }
 0x425   :  { %832 = vmatpush.bf16.msrb.mxu1 %v1101_v14  ;;  %vm936_vm0 = vcmask 519168  }
 0x426   :  { %v674_v11 = vmul.f32 %v670_v10, %v666_v21  ;;  %v677_v27 = vpack.c.bf16 %v673_v22, %v673_v22  ;;  %v664_v28 = vpack.c.bf16 %v661_v9, %v663_v24  ;;  %v671_v29 = vunpack.c.l.bf16 %v657_v23 }
 0x428   :  { %v678_v20 = vpack.c.bf16 %v674_v11, %v674_v11  ;;  %v709_v32 = vunpack.c.l.b16 %v677_v27  ;;  %v672_v33 = vunpack.c.l.bf16 %v664_v28  ;;  %v675_v34 = vmul.f32 %v671_v29, %v667_v25 }
 0x429   :  { %833 = vmatpush.bf16.msrb.mxu1 %v1100_v7 }
 0x42a   :  { %v710_v37 = vunpack.c.l.b16 %v678_v20  ;;  %v676_v38 = vmul.f32 %v672_v33, %v668_v12  ;;  %v679_v42 = vpack.c.bf16 %v675_v34, %v675_v34 }
 0x42c   :  { %v713_v40 = vpack.c.b16 %v710_v37, %v709_v32  ;;  %v680_v43 = vpack.c.bf16 %v676_v38, %v676_v38  ;;  %v711_v44 = vunpack.c.l.b16 %v679_v42 }
 0x42d   :  { %834 = vmatpush.bf16.msrb.mxu1 %v1099_v47 }
 0x42e   :  { %741 = vrot.lane.b32.xlu2 %v713_v40, %s1199_s21  ;;  %v719_v45 = vshll.u32 %v713_v40, 16  ;;  %v716_v46 = vshrl.u32 %v713_v40, 16  ;;  %v712_v30 = vunpack.c.l.b16 %v680_v43 }
 0x430   :  { %v733_v48 = vrot.slane %v719_v45, 1  ;;  %v714_v49 = vpack.c.b16 %v712_v30, %v711_v44  ;;  %v718_v50 = vrot.slane %v716_v46, 7 }
 0x431   :  { %835 = vmatpush.bf16.msrb.mxu1 %v1098_v53 }
 0x432   :  { %v734_v31 = vor.u32 %v733_v48, %v716_v46  ;;  %v723_v51 = vshrl.u32 %v714_v49, 16  ;;  %v721_v52 = vor.u32 %v719_v45, %v718_v50  ;;  %v726_v55 = vshll.u32 %v714_v49, 16 }
 0x434   :  { %v739_v54 = vsel %vm1337_vm7, %v734_v31, 0  ;;  %v725_v56 = vrot.slane %v723_v51, 7  ;;  %v735_v60 = vrot.slane %v726_v55, 1  ;;  %v731_v0 = vsel %vm1353_vm10, 0, %v721_v52 }
 0x435   :  { %1061 = vmatmul.msk.bf16.vlgmr.msrb.gmra.mxu3 %vm357_vm11, %v739_v54  ;;  %836 = vmatpush.bf16.msrb.mxu1 %v1097_v58 }
 0x436   :  { %743 = vrot.lane.b32.xlu2 %v714_v49, %s1199_s21  ;;  %v728_v57 = vor.u32 %v726_v55, %v725_v56  ;;  %v736_v61 = vor.u32 %v735_v60, %v723_v51 }
 0x438   :  { %v740_v62 = vsel %vm1337_vm7, %v736_v61, 0  ;;  %v732_v1 = vsel %vm1353_vm10, 0, %v728_v57 }
 0x439   :  { %837 = vmatpush.bf16.msrb.mxu1 %v1096_v59 }
 0x43d   :  { %838 = vmatpush.bf16.msrb.mxu1 %v1095_v36 }
 0x445   :  { %1062 = vmatmul.msk.bf16.gmra.mxu3 %vm357_vm11, %v740_v62 }
 0x488   :  { %v742_v41 = vpop.permute.xlu2 %741 }
 0x489   :  { %v747_v2 = vsel %vm357_vm11, %v731_v0, %v742_v41 }
 0x48a   :  { %839 = vmatmul.bf16.vlgmr.msrb.gmra.mxu1 %v747_v2 }
 0x490   :  { %v744_v3 = vpop.permute.xlu2 %743 }
 0x491   :  { %v751_v4 = vsel %vm357_vm11, %v732_v1, %v744_v3  ;;  %v918_v6 = vpop.f32.mrf.mxu0 }
 0x499   :  { %v920_v10 = vpop.f32.mrf.mxu0 }
 0x49a   :  { %844 = vmatmul.bf16.gmra.mxu1 %v751_v4 }
 0x4a1   :  { %v923_v28 = vpop.f32.mrf.mxu0 }
 0x4a9   :  { %v925_v34 = vpop.f32.mrf.mxu0 }
 0x4b8   :  { %v859_v5 = vpop.f32.mrf.mxu3 }
 0x4c0   :  { %v861_v8 = vpop.f32.mrf.mxu3 }
 0x4c8   :  { %v864_v25 = vpop.f32.mrf.mxu3 }
 0x4d0   :  { %v866_v14 = vpop.f32.mrf.mxu3 }
 0x507   :  { %v840_v16 = vpop.f32.mrf.mxu1 }
 0x508   :  { %v860_v18 = vadd.f32 %v859_v5, %v840_v16 }
 0x50a   :  { %v873_v19 = vadd.f32 %v1118_v15, %v860_v18 }
 0x50c   :  { %v928_v21 = vadd.f32 %v918_v6, %v873_v19 }
 0x50e   :  { %v932_v9 = vpack.c.bf16 %v928_v21, %v928_v21 }
 0x50f   :  { %v842_v22 = vpop.f32.mrf.mxu1 }
 0x510   :  { %937 = vst.msk [vmem:[#allocation2] sm:$0xf] %vm936_vm0, %v932_v9  ;;  %v862_v17 = vadd.f32 %v861_v8, %v842_v22 }
 0x512   :  { %v874_v23 = vadd.f32 %v1118_v15, %v862_v17 }
 0x514   :  { %v929_v24 = vadd.f32 %v920_v10, %v874_v23 }
 0x516   :  { %v933_v26 = vpack.c.bf16 %v929_v24, %v929_v24 }
 0x517   :  { %v845_v11 = vpop.f32.mrf.mxu1 }
 0x518   :  { %938 = vst.msk [vmem:[#allocation2 + $0x4] sm:$0xf] %vm936_vm0, %v933_v26  ;;  %v865_v27 = vadd.f32 %v864_v25, %v845_v11 }
 0x51a   :  { %v875_v29 = vadd.f32 %v1118_v15, %v865_v27 }
 0x51c   :  { %v930_v13 = vadd.f32 %v923_v28, %v875_v29 }
 0x51e   :  { %v934_v12 = vpack.c.bf16 %v930_v13, %v930_v13 }
 0x51f   :  { %v847_v20 = vpop.f32.mrf.mxu1 }
 0x520   :  { %939 = vst.msk [vmem:[#allocation2 + $0x8] sm:$0xf] %vm936_vm0, %v934_v12  ;;  %v867_v32 = vadd.f32 %v866_v14, %v847_v20 }
 0x522   :  { %v876_v33 = vadd.f32 %v1118_v15, %v867_v32 }
 0x524   :  { %v931_v35 = vadd.f32 %v925_v34, %v876_v33 }
 0x526   :  { %v935_v37 = vpack.c.bf16 %v931_v35, %v931_v35 }
 0x528   :  { %940 = vst.msk [vmem:[#allocation2 + $0xc] sm:$0xf] %vm936_vm0, %v935_v37 }
 0x529   :  { %953 = dma.vmem_to_hbm [thread:$0]  %s946_s5, 256, %s948_s7, [#allocation3], %s1199_s21, %s1199_s21, %s1201_s26  }
 0x52a   :  { %1195 = dma.done.wait [#allocation3], 256  }
 0x52b   :  { %1196 = vsyncadd [#allocation3], 4294967040 }
 0x52c   :  { %958 = vsyncpa [#allocation3], 1 }

// kernel: tpu_custom_call.1
= control target key start
LH: loop header
LB: loop body
LE: loop exit
PB: predicated region body
PF: predicated region fallthrough
CT: control target
= control target key end

     0   :  { %vm58_vm0 = vcmask 261120   ;;  %s1511_s0 = inlined_call_operand.vmem [shape: bf16[2,16,32], index: 0, kind: input, shape index: {}]   ;;  %s1512_s1 = inlined_call_operand.vmem [shape: f32[2,1,64], index: 1, kind: input, shape index: {}]   ;;  %s1513_s2 = inlined_call_operand.vmem [shape: f32[1,32], index: 2, kind: input, shape index: {}]   ;;  %s1514_s3 = inlined_call_operand.vmem [shape: f32[1,32], index: 3, kind: input, shape index: {}]   ;;  %s1515_s4 = inlined_call_operand.vmem [shape: bf16[32,32], index: 4, kind: input, shape index: {}]   ;;  %s1516_s5 = inlined_call_operand.vmem [shape: bf16[96,64], index: 5, kind: input, shape index: {}]   ;;  %s1517_s6 = inlined_call_operand.vmem [shape: f32[1,64], index: 6, kind: input, shape index: {}]   ;;  %s1518_s7 = inlined_call_operand.vmem [shape: f32[1,64], index: 7, kind: input, shape index: {}]   ;;  %s1519_s8 = inlined_call_operand.vmem [shape: bf16[64,64], index: 8, kind: input, shape index: {}]   ;;  %s1520_s9 = inlined_call_operand.vmem [shape: bf16[192,64], index: 9, kind: input, shape index: {}]   ;;  %s1521_s10 = inlined_call_operand.vmem [shape: f32[1,64], index: 10, kind: input, shape index: {}]   ;;  %s1522_s11 = inlined_call_operand.vmem [shape: bf16[32,64], index: 11, kind: input, shape index: {}]   ;;  %s1523_s12 = inlined_call_operand.hbm [shape: bf16[2,16,64], index: 12, kind: output, shape index: {}]  }
   0x1   :  { %v1084_v0 = vld [vmem:[%s1515_s4 + $0x8] sm:$0xff]  ;;  %v1083_v1 = vld [vmem:[%s1515_s4] sm:$0xff] }
   0x2   :  { %v44_v2 = vld [vmem:[%s1511_s0] sm:$0xff]   ;;  %v46_v3 = vld [vmem:[%s1511_s0 + $0x8] sm:$0xff]   ;;  %107 = vmatpush.bf16.msra.mxu2 %v1084_v0  ;;  %164 = vmatpush.bf16.msra.mxu1 %v1084_v0 }
   0x3   :  { %v48_v4 = vunpack.c.l.bf16 %v44_v2  ;;  %v49_v5 = vunpack.c.h.bf16 %v44_v2  ;;  %v50_v6 = vunpack.c.l.bf16 %v46_v3  ;;  %v51_v7 = vunpack.c.h.bf16 %v46_v3 }
   0x5   :  { %v59_v8 = vsel %vm58_vm0, %v48_v4, 0.0  ;;  %v60_v9 = vsel %vm58_vm0, %v49_v5, 0.0 }
   0x6   :  { %17 = vsyncpa [#allocation3], 0  ;;  %v61_v10 = vadd.f32 %v60_v9, %v59_v8  ;;  %v68_v11 = vsel %vm58_vm0, %v50_v6, 0.0  ;;  %v69_v12 = vsel %vm58_vm0, %v51_v7, 0.0  ;;  %108 = vmatpush.bf16.msra.mxu2 %v1083_v1  ;;  %165 = vmatpush.bf16.msra.mxu1 %v1083_v1  ;;  %vm83_vm1 = vcmask 1041409   ;;  %s1198_s20 = smov 32  }
   0x7   :  { %v70_v13 = vadd.f32 %v69_v12, %v68_v11  ;;  %vm336_vm5 = vcmask 1047552   ;;  %vm337_vm6 = vsmask.f32 7424  ;;  %s1199_s21 = smov 64   ;;  %vm325_vm8 = vcmask 1040384   ;;  %s1200_s25 = smov [#allocation2]  }
   0x8   :  { %v62_v14 = vrot.slane %v61_v10, 4  ;;  %vm1337_vm7 = vmand %vm336_vm5, %vm337_vm6  ;;  %vm326_vm9 = vsmask.f32 256  ;;  %vm357_vm11 = vcmask 523264   ;;  %vm398_vm12 = vcmask 785408   ;;  %s1201_s26 = smov 4  }
   0x9   :  { %v71_v15 = vrot.slane %v70_v13, 4  ;;  %vm1353_vm10 = vmand %vm325_vm8, %vm326_vm9 }
   0xa   :  { %v63_v16 = vadd.f32 %v62_v14, %v61_v10 }
   0xb   :  { %v72_v17 = vadd.f32 %v71_v15, %v70_v13  ;;  %v56_v15 = vld [vmem:[%s1513_s2] sm:$0x1] }
   0xc   :  { %v64_v18 = vrot.slane %v63_v16, 2 }
   0xd   :  { %v73_v19 = vrot.slane %v72_v17, 2 }
   0xe   :  { %v65_v20 = vadd.f32 %v64_v18, %v63_v16 }
   0xf   :  { %v74_v21 = vadd.f32 %v73_v19, %v72_v17 }
  0x10   :  { %v66_v22 = vrot.slane %v65_v20, 1 }
  0x11   :  { %v75_v23 = vrot.slane %v74_v21, 1 }
  0x12   :  { %v67_v24 = vadd.f32 %v66_v22, %v65_v20  ;;  %v1114_v22 = vld [vmem:[%s1514_s3] ss:$0 sm:$0xff] }
  0x13   :  { %v76_v25 = vadd.f32 %v75_v23, %v74_v21 }
  0x14   :  { %v77_v26 = vpack.c.bf16 %v67_v24, %v67_v24 }
  0x15   :  { %v78_v27 = vpack.c.bf16 %v76_v25, %v76_v25 }
  0x16   :  { %v81_v28 = vunpack.c.l.b16 %v77_v26 }
  0x17   :  { %v82_v29 = vunpack.c.l.b16 %v78_v27 }
  0x19   :  { %v84_v30 = vsel %vm83_vm1, %v82_v29, %v81_v28 }
  0x1a   :  { %v85_v31 = vpack.c.b16 %v84_v30, %v84_v30 }
  0x1c   :  { %967 = vmatmul.msk.bf16.vlgmr.msra.gmra.mxu2 %vm58_vm0, %v85_v31 }
  0x9f   :  { %v110_v32 = vpop.f32.mrf.mxu2 }
  0xa0   :  { %v114_v33 = vmul.f32 0.0625, %v110_v32 }
  0xa2   :  { %v116_v34 = vrot.slane %v114_v33, 1  ;;  %v117_v35 = vperm.slane %v114_v33, 0 }
  0xa4   :  { %v118_v36 = vperm.slane %v116_v34, 0  ;;  %v121_v37 = vsub.f32 %v48_v4, %v117_v35  ;;  %v122_v38 = vsub.f32 %v49_v5, %v117_v35 }
  0xa6   :  { %v123_v39 = vsub.f32 %v50_v6, %v118_v36  ;;  %v124_v40 = vsub.f32 %v51_v7, %v118_v36  ;;  %v125_v41 = vmul.f32 %v121_v37, %v121_v37  ;;  %v126_v42 = vmul.f32 %v122_v38, %v122_v38 }
  0xa7   :  { %v112_v43 = vpop.f32.mrf.mxu2 }
  0xa8   :  { %v127_v44 = vmul.f32 %v123_v39, %v123_v39  ;;  %v128_v45 = vmul.f32 %v124_v40, %v124_v40  ;;  %v129_v46 = vsel %vm58_vm0, %v125_v41, 0.0  ;;  %v130_v47 = vsel %vm58_vm0, %v126_v42, 0.0 }
  0xa9   :  { %v131_v48 = vadd.f32 %v130_v47, %v129_v46 }
  0xaa   :  { %v138_v49 = vsel %vm58_vm0, %v127_v44, 0.0  ;;  %v139_v50 = vsel %vm58_vm0, %v128_v45, 0.0 }
  0xab   :  { %v132_v51 = vrot.slane %v131_v48, 4  ;;  %v140_v52 = vadd.f32 %v139_v50, %v138_v49 }
  0xad   :  { %v133_v53 = vadd.f32 %v132_v51, %v131_v48  ;;  %v141_v54 = vrot.slane %v140_v52, 4 }
  0xaf   :  { %v134_v55 = vrot.slane %v133_v53, 2  ;;  %v142_v56 = vadd.f32 %v141_v54, %v140_v52 }
  0xb1   :  { %v135_v57 = vadd.f32 %v134_v55, %v133_v53  ;;  %v143_v58 = vrot.slane %v142_v56, 2 }
  0xb3   :  { %v136_v59 = vrot.slane %v135_v57, 1  ;;  %v144_v60 = vadd.f32 %v143_v58, %v142_v56 }
  0xb5   :  { %v137_v61 = vadd.f32 %v136_v59, %v135_v57  ;;  %v145_v62 = vrot.slane %v144_v60, 1 }
  0xb7   :  { %v146_v63 = vadd.f32 %v145_v62, %v144_v60  ;;  %v147_v0 = vpack.c.bf16 %v137_v61, %v137_v61 }
  0xb9   :  { %v148_v1 = vpack.c.bf16 %v146_v63, %v146_v63  ;;  %v151_v2 = vunpack.c.l.b16 %v147_v0 }
  0xbb   :  { %v152_v3 = vunpack.c.l.b16 %v148_v1 }
  0xbd   :  { %v153_v4 = vsel %vm83_vm1, %v152_v3, %v151_v2 }
  0xbe   :  { %v154_v5 = vpack.c.b16 %v153_v4, %v153_v4 }
  0xc0   :  { %968 = vmatmul.msk.bf16.vlgmr.msra.gmra.mxu1 %vm58_vm0, %v154_v5 }
 0x13d   :  { %v167_v6 = vpop.f32.mrf.mxu1 }
 0x13e   :  { %v171_v7 = vmul.f32 0.0625, %v167_v6 }
 0x140   :  { %v172_v8 = vadd.f32 1e-06, %v171_v7 }
 0x142   :  { %1119 = vrsqrt.f32 %v172_v8  ;;  %vm179_vm3 = vweird.f32 %v172_v8 }
 0x145   :  { %v169_v9 = vpop.f32.mrf.mxu1 }
 0x148   :  { %v1120_v10 = vpop.eup %1119 }
 0x149   :  { %v174_v11 = vmul.f32 %v1120_v10, %v172_v8  ;;  %vm180_vm2 = vweird.f32 %v1120_v10 }
 0x14a   :  { %vm181_vm4 = vmor %vm179_vm3, %vm180_vm2 }
 0x14b   :  { %v175_v12 = vmul.f32 %v1120_v10, %v174_v11  ;;  %v1197_v11 = vmov 1065369472  }
 0x14d   :  { %v176_v13 = vmul.f32 0.5, %v175_v12  ;;  %v1309_v12 = vunpack.c.h.bf16 %v1197_v11 }
 0x14f   :  { %v177_v14 = vsub.f32 1.5, %v176_v13 }
 0x151   :  { %v178_v16 = vmul.f32 %v1120_v10, %v177_v14  ;;  %v1311_v14 = vunpack.c.l.bf16 %v1197_v11 }
 0x153   :  { %v182_v17 = vsel %vm181_vm4, %v1120_v10, %v178_v16 }
 0x154   :  { %v184_v18 = vrot.slane %v182_v17, 1  ;;  %v186_v19 = vmul.f32 %v182_v17, %v56_v15  ;;  %v1089_v17 = vld [vmem:[%s1516_s5 + $0x20] sm:$0xff] }
 0x156   :  { %v187_v20 = vmul.f32 %v184_v18, %v56_v15  ;;  %v190_v21 = vperm.slane %v186_v19, 0  ;;  %v1090_v15 = vld [vmem:[%s1516_s5 + $0x28] sm:$0xff] }
 0x157   :  { %405 = vmatpush.bf16.msrb.mxu2 %v1090_v15  ;;  %v1085_v15 = vld [vmem:[%s1516_s5] sm:$0xff] }
 0x158   :  { %v191_v23 = vperm.slane %v187_v20, 0  ;;  %v194_v24 = vmul.f32 %v190_v21, %v121_v37  ;;  %v195_v25 = vmul.f32 %v190_v21, %v122_v38 }
 0x15a   :  { %v201_v26 = vadd.f32 %v1114_v22, %v194_v24  ;;  %v202_v27 = vadd.f32 %v1114_v22, %v195_v25  ;;  %v196_v28 = vmul.f32 %v191_v23, %v123_v39  ;;  %v197_v29 = vmul.f32 %v191_v23, %v124_v40 }
 0x15b   :  { %406 = vmatpush.bf16.msrb.mxu2 %v1089_v17 }
 0x15c   :  { %v1297_v30 = vpack.c.bf16 %v201_v26, %v201_v26  ;;  %v1299_v31 = vpack.c.bf16 %v202_v27, %v202_v27  ;;  %v203_v32 = vadd.f32 %v1114_v22, %v196_v28  ;;  %v204_v33 = vadd.f32 %v1114_v22, %v197_v29  ;;  %v1088_v27 = vld [vmem:[%s1516_s5 + $0x18] sm:$0xff] }
 0x15e   :  { %v209_v34 = vxor.u32 2147516416, %v1297_v30  ;;  %v210_v35 = vxor.u32 2147516416, %v1299_v31  ;;  %v1303_v36 = vpack.c.bf16 %v203_v32, %v203_v32  ;;  %v1305_v41 = vpack.c.bf16 %v204_v33, %v204_v33 }
 0x15f   :  { %407 = vmatpush.bf16.msrb.mxu2 %v1088_v27 }
 0x160   :  { %v213_v37 = vunpack.c.l.bf16 %v209_v34  ;;  %v214_v38 = vunpack.c.l.bf16 %v210_v35  ;;  %v211_v42 = vxor.u32 2147516416, %v1303_v36  ;;  %v212_v39 = vxor.u32 2147516416, %v1305_v41 }
 0x161   :  { %v271_v34 = vunpack.c.l.bf16 %v1297_v30  ;;  %v273_v30 = vunpack.c.l.bf16 %v1303_v36 }
 0x162   :  { %v217_v40 = vmul.f32 1.442695, %v213_v37  ;;  %v219_v43 = vmul.f32 1.442695, %v214_v38  ;;  %v215_v44 = vunpack.c.l.bf16 %v211_v42  ;;  %v216_v45 = vunpack.c.l.bf16 %v212_v39 }
 0x163   :  { %v272_v42 = vunpack.c.l.bf16 %v1299_v31  ;;  %v274_v31 = vunpack.c.l.bf16 %v1305_v41 }
 0x164   :  { %1121 = vpow2.f32 %v217_v40  ;;  %v221_v46 = vmul.f32 1.442695, %v215_v44  ;;  %v223_v47 = vmul.f32 1.442695, %v216_v45 }
 0x165   :  { %1123 = vpow2.f32 %v219_v43 }
 0x166   :  { %1125 = vpow2.f32 %v221_v46  ;;  %v1087_v46 = vld [vmem:[%s1516_s5 + $0x10] sm:$0xff] }
 0x167   :  { %1127 = vpow2.f32 %v223_v47  ;;  %408 = vmatpush.bf16.msrb.mxu2 %v1087_v46 }
 0x16a   :  { %v1122_v48 = vpop.eup %1121 }
 0x16b   :  { %v1124_v49 = vpop.eup %1123  ;;  %v225_v50 = vpack.c.bf16 %v1122_v48, %v1122_v48 }
 0x16c   :  { %v226_v51 = vpack.c.bf16 %v1124_v49, %v1124_v49  ;;  %v1126_v52 = vpop.eup %1125 }
 0x16d   :  { %v229_v53 = vunpack.c.l.bf16 %v225_v50  ;;  %v1128_v54 = vpop.eup %1127  ;;  %v227_v56 = vpack.c.bf16 %v1126_v52, %v1126_v52 }
 0x16e   :  { %v230_v55 = vunpack.c.l.bf16 %v226_v51  ;;  %v228_v58 = vpack.c.bf16 %v1128_v54, %v1128_v54 }
 0x16f   :  { %v233_v57 = vadd.f32 1.0, %v229_v53  ;;  %v231_v60 = vunpack.c.l.bf16 %v227_v56 }
 0x170   :  { %v234_v59 = vadd.f32 1.0, %v230_v55  ;;  %v232_v62 = vunpack.c.l.bf16 %v228_v58 }
 0x171   :  { %v237_v61 = vpack.c.bf16 %v233_v57, %v233_v57  ;;  %v235_v0 = vadd.f32 1.0, %v231_v60 }
 0x172   :  { %v238_v63 = vpack.c.bf16 %v234_v59, %v234_v59  ;;  %v236_v3 = vadd.f32 1.0, %v232_v62 }
 0x173   :  { %v243_v1 = vunpack.c.h.bf16 %v237_v61  ;;  %v244_v2 = vunpack.c.l.bf16 %v237_v61  ;;  %v239_v6 = vpack.c.bf16 %v235_v0, %v235_v0 }
 0x174   :  { %v250_v4 = vunpack.c.h.bf16 %v238_v63  ;;  %v251_v5 = vunpack.c.l.bf16 %v238_v63  ;;  %v240_v7 = vpack.c.bf16 %v236_v3, %v236_v3 }
 0x175   :  { %1129 = vrcp.f32 %v243_v1  ;;  %v257_v8 = vunpack.c.h.bf16 %v239_v6  ;;  %v258_v9 = vunpack.c.l.bf16 %v239_v6 }
 0x176   :  { %1131 = vrcp.f32 %v244_v2  ;;  %v264_v10 = vunpack.c.h.bf16 %v240_v7  ;;  %v265_v13 = vunpack.c.l.bf16 %v240_v7 }
 0x177   :  { %1133 = vrcp.f32 %v250_v4 }
 0x178   :  { %1135 = vrcp.f32 %v251_v5 }
 0x179   :  { %1137 = vrcp.f32 %v257_v8 }
 0x17a   :  { %1139 = vrcp.f32 %v258_v9 }
 0x17b   :  { %v1130_v16 = vpop.eup %1129  ;;  %1141 = vrcp.f32 %v264_v10 }
 0x17c   :  { %v1132_v18 = vpop.eup %1131  ;;  %v246_v19 = vmul.f32 %v1130_v16, %v1309_v12  ;;  %1143 = vrcp.f32 %v265_v13  ;;  %v1086_v13 = vld [vmem:[%s1516_s5 + $0x8] sm:$0xff]  ;;  %s945_s5 = sshll.u32 %s1200_s25, 4  ;;  %s946_s5 = int_to_ptr.vmem [resolvable:$true] %s945_s5 }
 0x17d   :  { %v1134_v20 = vpop.eup %1133  ;;  %v248_v21 = vmul.f32 %v1132_v18, %v1311_v14  ;;  %409 = vmatpush.bf16.msrb.mxu2 %v1086_v13 }
 0x17e   :  { %v1136_v22 = vpop.eup %1135  ;;  %v253_v23 = vmul.f32 %v1134_v20, %v1309_v12 }
 0x17f   :  { %v1138_v24 = vpop.eup %1137  ;;  %v249_v25 = vpack.c.bf16 %v246_v19, %v248_v21  ;;  %v255_v26 = vmul.f32 %v1136_v22, %v1311_v14 }
 0x180   :  { %v1140_v28 = vpop.eup %1139  ;;  %v260_v29 = vmul.f32 %v1138_v24, %v1309_v12 }
 0x181   :  { %v1142_v32 = vpop.eup %1141  ;;  %v256_v33 = vpack.c.bf16 %v253_v23, %v255_v26  ;;  %v275_v35 = vunpack.c.l.bf16 %v249_v25  ;;  %v262_v37 = vmul.f32 %v1140_v28, %v1311_v14  ;;  %410 = vmatpush.bf16.msrb.mxu2 %v1085_v15  ;;  %v1094_v28 = vld [vmem:[%s1519_s8 + $0x18] sm:$0xff] }
 0x182   :  { %v1144_v38 = vpop.eup %1143  ;;  %v267_v39 = vmul.f32 %v1142_v32, %v1309_v12  ;;  %501 = vmatpush.bf16.msra.mxu3 %v1094_v28  ;;  %558 = vmatpush.bf16.msra.mxu0 %v1094_v28  ;;  %v1093_v32 = vld [vmem:[%s1519_s8 + $0x10] sm:$0xff] }
 0x183   :  { %v276_v40 = vunpack.c.l.bf16 %v256_v33  ;;  %v279_v43 = vmul.f32 %v275_v35, %v271_v34  ;;  %v263_v44 = vpack.c.bf16 %v260_v29, %v262_v37  ;;  %v269_v45 = vmul.f32 %v1144_v38, %v1311_v14  ;;  %v1115_v29 = vld [vmem:[%s1512_s1] ss:$0 sm:$0xff]  ;;  %v1092_v35 = vld [vmem:[%s1519_s8 + $0x8] sm:$0xff] }
 0x185   :  { %v280_v47 = vmul.f32 %v276_v40, %v272_v42  ;;  %v283_v48 = vpack.c.bf16 %v279_v43, %v279_v43  ;;  %v270_v49 = vpack.c.bf16 %v267_v39, %v269_v45  ;;  %v277_v50 = vunpack.c.l.bf16 %v263_v44  ;;  %v1091_v40 = vld [vmem:[%s1519_s8] sm:$0xff] }
 0x186   :  { %502 = vmatpush.bf16.msra.mxu3 %v1093_v32  ;;  %559 = vmatpush.bf16.msra.mxu0 %v1093_v32  ;;  %v1116_v45 = vld [vmem:[%s1512_s1 + $0x1] ss:$0 sm:$0xff] }
 0x187   :  { %v284_v51 = vpack.c.bf16 %v280_v47, %v280_v47  ;;  %v303_v52 = vunpack.c.l.b16 %v283_v48  ;;  %v278_v53 = vunpack.c.l.bf16 %v270_v49  ;;  %v281_v54 = vmul.f32 %v277_v50, %v273_v30 }
 0x189   :  { %v304_v55 = vunpack.c.l.b16 %v284_v51  ;;  %v282_v56 = vmul.f32 %v278_v53, %v274_v31  ;;  %v285_v57 = vpack.c.bf16 %v281_v54, %v281_v54 }
 0x18a   :  { %503 = vmatpush.bf16.msra.mxu3 %v1092_v35  ;;  %560 = vmatpush.bf16.msra.mxu0 %v1092_v35 }
 0x18b   :  { %v307_v58 = vpack.c.b16 %v304_v55, %v303_v52  ;;  %v286_v59 = vpack.c.bf16 %v282_v56, %v282_v56  ;;  %v305_v60 = vunpack.c.l.b16 %v285_v57 }
 0x18d   :  { %341 = vrot.lane.b32.xlu0 %v307_v58, %s1198_s20  ;;  %v306_v36 = vunpack.c.l.b16 %v286_v59  ;;  %v310_v61 = vshrl.u32 %v307_v58, 16  ;;  %v313_v62 = vshll.u32 %v307_v58, 16 }
 0x18e   :  { %504 = vmatpush.bf16.msra.mxu3 %v1091_v40  ;;  %561 = vmatpush.bf16.msra.mxu0 %v1091_v40 }
 0x18f   :  { %v308_v63 = vpack.c.b16 %v306_v36, %v305_v60  ;;  %v330_v41 = vrot.slane %v313_v62, 1  ;;  %v312_v0 = vrot.slane %v310_v61, 7 }
 0x191   :  { %343 = vrot.lane.b32.xlu1 %v308_v63, %s1198_s20  ;;  %v331_v2 = vor.u32 %v330_v41, %v310_v61  ;;  %v317_v3 = vshrl.u32 %v308_v63, 16  ;;  %v320_v4 = vshll.u32 %v308_v63, 16  ;;  %v315_v5 = vor.u32 %v313_v62, %v312_v0 }
 0x193   :  { %v339_v6 = vsel %vm1337_vm7, %v331_v2, 0  ;;  %v332_v7 = vrot.slane %v320_v4, 1  ;;  %v319_v8 = vrot.slane %v317_v3, 7  ;;  %v328_v18 = vsel %vm1353_vm10, 0, %v315_v5 }
 0x195   :  { %347 = vrot.lane.b32.xlu0 %v339_v6, %s1199_s21  ;;  %v333_v9 = vor.u32 %v332_v7, %v317_v3  ;;  %v322_v10 = vor.u32 %v320_v4, %v319_v8 }
 0x197   :  { %v340_v11 = vsel %vm1337_vm7, %v333_v9, 0  ;;  %v329_v24 = vsel %vm1353_vm10, 0, %v322_v10 }
 0x199   :  { %349 = vrot.lane.b32.xlu1 %v340_v11, %s1199_s21 }
 0x1ff   :  { %v342_v16 = vpop.permute.xlu0 %341 }
 0x200   :  { %v353_v19 = vsel %vm58_vm0, %v328_v18, %v342_v16 }
 0x203   :  { %v344_v22 = vpop.permute.xlu1 %343 }
 0x204   :  { %v356_v25 = vsel %vm58_vm0, %v329_v24, %v344_v22 }
 0x207   :  { %v348_v20 = vpop.permute.xlu0 %347 }
 0x208   :  { %v359_v21 = vsel %vm357_vm11, %v353_v19, %v348_v20 }
 0x209   :  { %993 = vmatmul.msk.bf16.vlgmr.msrb.gmra.mxu2 %vm398_vm12, %v359_v21 }
 0x20b   :  { %v350_v23 = vpop.permute.xlu1 %349 }
 0x20c   :  { %v361_v26 = vsel %vm357_vm11, %v356_v25, %v350_v23 }
 0x219   :  { %994 = vmatmul.msk.bf16.gmra.mxu2 %vm398_vm12, %v361_v26 }
 0x28c   :  { %v412_v27 = vpop.f32.mrf.mxu2 }
 0x28d   :  { %v430_v33 = vadd.f32 %v1115_v29, %v412_v27 }
 0x28f   :  { %v444_v38 = vsel %vm357_vm11, %v430_v33, 0.0 }
 0x294   :  { %v414_v34 = vpop.f32.mrf.mxu2 }
 0x295   :  { %v431_v37 = vadd.f32 %v1115_v29, %v414_v34 }
 0x297   :  { %v445_v42 = vsel %vm357_vm11, %v431_v37, 0.0 }
 0x298   :  { %v446_v39 = vadd.f32 %v445_v42, %v444_v38 }
 0x29a   :  { %v447_v43 = vrot.slane %v446_v39, 4 }
 0x29c   :  { %v417_v44 = vpop.f32.mrf.mxu2  ;;  %v448_v46 = vadd.f32 %v447_v43, %v446_v39 }
 0x29d   :  { %v432_v30 = vadd.f32 %v1116_v45, %v417_v44 }
 0x29e   :  { %v449_v47 = vrot.slane %v448_v46, 2 }
 0x29f   :  { %v453_v50 = vsel %vm357_vm11, %v432_v30, 0.0 }
 0x2a0   :  { %v450_v51 = vadd.f32 %v449_v47, %v448_v46  ;;  %v1105_v47 = vld [vmem:[%s1520_s9 + $0x50] sm:$0xff] }
 0x2a2   :  { %v451_v54 = vrot.slane %v450_v51, 1 }
 0x2a4   :  { %v419_v48 = vpop.f32.mrf.mxu2  ;;  %v452_v57 = vadd.f32 %v451_v54, %v450_v51 }
 0x2a5   :  { %v433_v49 = vadd.f32 %v1116_v45, %v419_v48 }
 0x2a6   :  { %v462_v36 = vpack.c.bf16 %v452_v57, %v452_v57  ;;  %v442_v57 = vld [vmem:[%s1517_s6] sm:$0x1] }
 0x2a7   :  { %v454_v31 = vsel %vm357_vm11, %v433_v49, 0.0 }
 0x2a8   :  { %v455_v52 = vadd.f32 %v454_v31, %v453_v50  ;;  %v466_v62 = vunpack.c.l.b16 %v462_v36  ;;  %v1104_v50 = vld [vmem:[%s1520_s9 + $0x48] sm:$0xff] }
 0x2aa   :  { %v456_v53 = vrot.slane %v455_v52, 4 }
 0x2ac   :  { %v457_v55 = vadd.f32 %v456_v53, %v455_v52 }
 0x2ae   :  { %v458_v56 = vrot.slane %v457_v55, 2 }
 0x2b0   :  { %v459_v58 = vadd.f32 %v458_v56, %v457_v55 }
 0x2b2   :  { %v460_v59 = vrot.slane %v459_v58, 1 }
 0x2b4   :  { %v461_v60 = vadd.f32 %v460_v59, %v459_v58 }
 0x2b6   :  { %v463_v61 = vpack.c.bf16 %v461_v60, %v461_v60 }
 0x2b8   :  { %v467_v63 = vunpack.c.l.b16 %v463_v61 }
 0x2ba   :  { %v468_v41 = vsel %vm83_vm1, %v467_v63, %v466_v62  ;;  %v1117_v63 = vld [vmem:[%s1518_s7] ss:$0 sm:$0xff]  ;;  %s947_s7 = sshll.u32 %s1523_s12, 4  ;;  %s948_s7 = int_to_ptr.hbm [resolvable:$true] %s947_s7 }
 0x2bb   :  { %v469_v0 = vpack.c.b16 %v468_v41, %v468_v41 }
 0x2bd   :  { %1011 = vmatmul.msk.bf16.vlgmr.msra.gmra.mxu3 %vm357_vm11, %v469_v0 }
 0x340   :  { %v506_v2 = vpop.f32.mrf.mxu3 }
 0x341   :  { %v510_v3 = vmul.f32 0.03125, %v506_v2 }
 0x343   :  { %v512_v4 = vrot.slane %v510_v3, 1  ;;  %v513_v5 = vperm.slane %v510_v3, 0 }
 0x345   :  { %v514_v6 = vperm.slane %v512_v4, 0  ;;  %v517_v7 = vsub.f32 %v430_v33, %v513_v5  ;;  %v518_v8 = vsub.f32 %v431_v37, %v513_v5 }
 0x347   :  { %v1389_v9 = vsub.f32 %v432_v30, %v514_v6  ;;  %v1391_v10 = vsub.f32 %v433_v49, %v514_v6  ;;  %v521_v11 = vmul.f32 %v517_v7, %v517_v7  ;;  %v522_v13 = vmul.f32 %v518_v8, %v518_v8  ;;  %v1106_v30 = vld [vmem:[%s1520_s9 + $0x58] sm:$0xff] }
 0x348   :  { %v508_v15 = vpop.f32.mrf.mxu3  ;;  %854 = vmatpush.bf16.msrb.mxu3 %v1106_v30 }
 0x349   :  { %v523_v16 = vmul.f32 %v1389_v9, %v1389_v9  ;;  %v524_v18 = vmul.f32 %v1391_v10, %v1391_v10  ;;  %v525_v19 = vsel %vm357_vm11, %v521_v11, 0.0  ;;  %v526_v20 = vsel %vm357_vm11, %v522_v13, 0.0 }
 0x34a   :  { %v527_v21 = vadd.f32 %v526_v20, %v525_v19 }
 0x34b   :  { %v534_v22 = vsel %vm357_vm11, %v523_v16, 0.0  ;;  %v535_v23 = vsel %vm357_vm11, %v524_v18, 0.0 }
 0x34c   :  { %v528_v24 = vrot.slane %v527_v21, 4  ;;  %v536_v25 = vadd.f32 %v535_v23, %v534_v22  ;;  %855 = vmatpush.bf16.msrb.mxu3 %v1105_v47 }
 0x34e   :  { %v529_v26 = vadd.f32 %v528_v24, %v527_v21  ;;  %v537_v27 = vrot.slane %v536_v25, 4 }
 0x350   :  { %v530_v28 = vrot.slane %v529_v26, 2  ;;  %v538_v29 = vadd.f32 %v537_v27, %v536_v25  ;;  %856 = vmatpush.bf16.msrb.mxu3 %v1104_v50 }
 0x352   :  { %v531_v32 = vadd.f32 %v530_v28, %v529_v26  ;;  %v539_v33 = vrot.slane %v538_v29, 2 }
 0x354   :  { %v532_v34 = vrot.slane %v531_v32, 1  ;;  %v540_v35 = vadd.f32 %v539_v33, %v538_v29 }
 0x356   :  { %v533_v37 = vadd.f32 %v532_v34, %v531_v32  ;;  %v541_v38 = vrot.slane %v540_v35, 1 }
 0x358   :  { %v542_v42 = vadd.f32 %v541_v38, %v540_v35  ;;  %v543_v39 = vpack.c.bf16 %v533_v37, %v533_v37  ;;  %v1103_v37 = vld [vmem:[%s1520_s9 + $0x40] sm:$0xff] }
 0x359   :  { %857 = vmatpush.bf16.msrb.mxu3 %v1103_v37 }
 0x35a   :  { %v544_v40 = vpack.c.bf16 %v542_v42, %v542_v42  ;;  %v547_v43 = vunpack.c.l.b16 %v543_v39 }
 0x35c   :  { %v548_v44 = vunpack.c.l.b16 %v544_v40 }
 0x35e   :  { %v549_v45 = vsel %vm83_vm1, %v548_v44, %v547_v43 }
 0x35f   :  { %v550_v46 = vpack.c.b16 %v549_v45, %v549_v45 }
 0x361   :  { %1012 = vmatmul.msk.bf16.vlgmr.msra.gmra.mxu0 %vm357_vm11, %v550_v46 }
 0x3de   :  { %v563_v48 = vpop.f32.mrf.mxu0 }
 0x3df   :  { %v567_v49 = vmul.f32 0.03125, %v563_v48 }
 0x3e1   :  { %v568_v31 = vadd.f32 1e-06, %v567_v49 }
 0x3e3   :  { %1145 = vrsqrt.f32 %v568_v31  ;;  %vm575_vm14 = vweird.f32 %v568_v31 }
 0x3e6   :  { %v565_v51 = vpop.f32.mrf.mxu0 }
 0x3e9   :  { %v1146_v52 = vpop.eup %1145 }
 0x3ea   :  { %v570_v53 = vmul.f32 %v1146_v52, %v568_v31  ;;  %vm576_vm13 = vweird.f32 %v1146_v52 }
 0x3eb   :  { %vm577_vm15 = vmor %vm575_vm14, %vm576_vm13 }
 0x3ec   :  { %v571_v54 = vmul.f32 %v1146_v52, %v570_v53 }
 0x3ee   :  { %v572_v55 = vmul.f32 0.5, %v571_v54 }
 0x3f0   :  { %v573_v56 = vsub.f32 1.5, %v572_v55 }
 0x3f2   :  { %v574_v58 = vmul.f32 %v1146_v52, %v573_v56 }
 0x3f4   :  { %v578_v59 = vsel %vm577_vm15, %v1146_v52, %v574_v58 }
 0x3f5   :  { %v580_v60 = vrot.slane %v578_v59, 1  ;;  %v582_v36 = vmul.f32 %v578_v59, %v442_v57 }
 0x3f7   :  { %v583_v61 = vmul.f32 %v580_v60, %v442_v57  ;;  %v586_v62 = vperm.slane %v582_v36, 0 }
 0x3f9   :  { %v587_v41 = vperm.slane %v583_v61, 0  ;;  %v590_v0 = vmul.f32 %v586_v62, %v517_v7  ;;  %v591_v2 = vmul.f32 %v586_v62, %v518_v8 }
 0x3fb   :  { %v597_v3 = vadd.f32 %v1117_v63, %v590_v0  ;;  %v598_v4 = vadd.f32 %v1117_v63, %v591_v2  ;;  %v592_v5 = vmul.f32 %v587_v41, %v1389_v9  ;;  %v593_v6 = vmul.f32 %v587_v41, %v1391_v10 }
 0x3fd   :  { %v1420_v11 = vpack.c.bf16 %v597_v3, %v597_v3  ;;  %v1422_v13 = vpack.c.bf16 %v598_v4, %v598_v4  ;;  %v599_v15 = vadd.f32 %v1117_v63, %v592_v5  ;;  %v600_v16 = vadd.f32 %v1117_v63, %v593_v6 }
 0x3ff   :  { %v605_v18 = vxor.u32 2147516416, %v1420_v11  ;;  %v606_v19 = vxor.u32 2147516416, %v1422_v13  ;;  %v1426_v20 = vpack.c.bf16 %v599_v15, %v599_v15  ;;  %v1428_v7 = vpack.c.bf16 %v600_v16, %v600_v16 }
 0x400   :  { %v665_v16 = vunpack.c.l.bf16 %v1420_v11 }
 0x401   :  { %v609_v8 = vunpack.c.l.bf16 %v605_v18  ;;  %v610_v21 = vunpack.c.l.bf16 %v606_v19  ;;  %v607_v9 = vxor.u32 2147516416, %v1426_v20  ;;  %v608_v10 = vxor.u32 2147516416, %v1428_v7 }
 0x403   :  { %v613_v22 = vmul.f32 1.442695, %v609_v8  ;;  %v615_v23 = vmul.f32 1.442695, %v610_v21  ;;  %v611_v24 = vunpack.c.l.bf16 %v607_v9  ;;  %v612_v25 = vunpack.c.l.bf16 %v608_v10 }
 0x404   :  { %v666_v21 = vunpack.c.l.bf16 %v1422_v13  ;;  %v1108_v13 = vld [vmem:[%s1522_s11 + $0x8] sm:$0xff] }
 0x405   :  { %1147 = vpow2.f32 %v613_v22  ;;  %v617_v26 = vmul.f32 1.442695, %v611_v24  ;;  %v619_v27 = vmul.f32 1.442695, %v612_v25  ;;  %v667_v25 = vunpack.c.l.bf16 %v1426_v20  ;;  %915 = vmatpush.bf16.msrb.mxu0 %v1108_v13 }
 0x406   :  { %1149 = vpow2.f32 %v615_v23 }
 0x407   :  { %1151 = vpow2.f32 %v617_v26  ;;  %v1102_v26 = vld [vmem:[%s1520_s9 + $0x38] sm:$0xff] }
 0x408   :  { %1153 = vpow2.f32 %v619_v27  ;;  %831 = vmatpush.bf16.msrb.mxu1 %v1102_v26 }
 0x40b   :  { %v1148_v28 = vpop.eup %1147 }
 0x40c   :  { %v1150_v29 = vpop.eup %1149  ;;  %v621_v32 = vpack.c.bf16 %v1148_v28, %v1148_v28 }
 0x40d   :  { %v622_v33 = vpack.c.bf16 %v1150_v29, %v1150_v29  ;;  %v1152_v34 = vpop.eup %1151 }
 0x40e   :  { %v625_v35 = vunpack.c.l.bf16 %v621_v32  ;;  %v1154_v38 = vpop.eup %1153  ;;  %v623_v39 = vpack.c.bf16 %v1152_v34, %v1152_v34 }
 0x40f   :  { %v626_v42 = vunpack.c.l.bf16 %v622_v33  ;;  %v624_v43 = vpack.c.bf16 %v1154_v38, %v1154_v38 }
 0x410   :  { %v629_v40 = vadd.f32 1.0, %v625_v35  ;;  %v627_v45 = vunpack.c.l.bf16 %v623_v39  ;;  %v1107_v35 = vld [vmem:[%s1522_s11] sm:$0xff] }
 0x411   :  { %v630_v44 = vadd.f32 1.0, %v626_v42  ;;  %v628_v30 = vunpack.c.l.bf16 %v624_v43  ;;  %v1081_v39 = vld [vmem:[%s1511_s0] sm:$0xff]  ;;  %916 = vmatpush.bf16.msrb.mxu0 %v1107_v35 }
 0x412   :  { %v633_v46 = vpack.c.bf16 %v629_v40, %v629_v40  ;;  %v631_v48 = vadd.f32 1.0, %v627_v45 }
 0x413   :  { %v634_v47 = vpack.c.bf16 %v630_v44, %v630_v44  ;;  %v632_v31 = vadd.f32 1.0, %v628_v30 }
 0x414   :  { %v637_v49 = vunpack.c.h.bf16 %v633_v46  ;;  %v638_v50 = vunpack.c.l.bf16 %v633_v46  ;;  %v635_v53 = vpack.c.bf16 %v631_v48, %v631_v48  ;;  %1079 = vmatmul.msk.bf16.vlgmr.msrb.gmra.mxu0 %vm58_vm0, %v1081_v39 }
 0x415   :  { %v644_v51 = vunpack.c.h.bf16 %v634_v47  ;;  %v645_v52 = vunpack.c.l.bf16 %v634_v47  ;;  %v636_v54 = vpack.c.bf16 %v632_v31, %v632_v31  ;;  %v1099_v47 = vld [vmem:[%s1520_s9 + $0x20] sm:$0xff] }
 0x416   :  { %1155 = vrcp.f32 %v637_v49  ;;  %v651_v55 = vunpack.c.h.bf16 %v635_v53  ;;  %v652_v56 = vunpack.c.l.bf16 %v635_v53  ;;  %v1098_v53 = vld [vmem:[%s1520_s9 + $0x18] sm:$0xff] }
 0x417   :  { %1157 = vrcp.f32 %v638_v50  ;;  %v658_v57 = vunpack.c.h.bf16 %v636_v54  ;;  %v659_v58 = vunpack.c.l.bf16 %v636_v54 }
 0x418   :  { %1159 = vrcp.f32 %v644_v51 }
 0x419   :  { %1161 = vrcp.f32 %v645_v52 }
 0x41a   :  { %1163 = vrcp.f32 %v651_v55 }
 0x41b   :  { %1165 = vrcp.f32 %v652_v56 }
 0x41c   :  { %v1156_v59 = vpop.eup %1155  ;;  %1167 = vrcp.f32 %v658_v57 }
 0x41d   :  { %v1158_v60 = vpop.eup %1157  ;;  %v640_v36 = vmul.f32 %v1156_v59, %v1309_v12  ;;  %1169 = vrcp.f32 %v659_v58  ;;  %v1097_v58 = vld [vmem:[%s1520_s9 + $0x10] sm:$0xff]  ;;  %v1096_v59 = vld [vmem:[%s1520_s9 + $0x8] sm:$0xff] }
 0x41e   :  { %v1160_v61 = vpop.eup %1159  ;;  %v642_v62 = vmul.f32 %v1158_v60, %v1311_v14 }
 0x41f   :  { %v1162_v63 = vpop.eup %1161  ;;  %v647_v41 = vmul.f32 %v1160_v61, %v1309_v12 }
 0x420   :  { %v1164_v0 = vpop.eup %1163  ;;  %v643_v2 = vpack.c.bf16 %v640_v36, %v642_v62  ;;  %v649_v3 = vmul.f32 %v1162_v63, %v1311_v14  ;;  %v1095_v36 = vld [vmem:[%s1520_s9] sm:$0xff]  ;;  %v1082_v63 = vld [vmem:[%s1511_s0 + $0x8] sm:$0xff] }
 0x421   :  { %v1166_v4 = vpop.eup %1165  ;;  %v654_v5 = vmul.f32 %v1164_v0, %v1309_v12 }
 0x422   :  { %v1168_v6 = vpop.eup %1167  ;;  %v650_v15 = vpack.c.bf16 %v647_v41, %v649_v3  ;;  %v669_v18 = vunpack.c.l.bf16 %v643_v2  ;;  %v656_v19 = vmul.f32 %v1166_v4, %v1311_v14 }
 0x423   :  { %v1170_v8 = vpop.eup %1169  ;;  %v661_v9 = vmul.f32 %v1168_v6, %v1309_v12  ;;  %v668_v12 = vunpack.c.l.bf16 %v1428_v7  ;;  %v1100_v7 = vld [vmem:[%s1520_s9 + $0x28] sm:$0xff] }
 0x424   :  { %v670_v10 = vunpack.c.l.bf16 %v650_v15  ;;  %v673_v22 = vmul.f32 %v669_v18, %v665_v16  ;;  %v657_v23 = vpack.c.bf16 %v654_v5, %v656_v19  ;;  %v663_v24 = vmul.f32 %v1170_v8, %v1311_v14  ;;  %v1101_v14 = vld [vmem:[%s1520_s9 + $0x30] sm:$0xff]  ;;  %1080 = vmatmul.msk.bf16.gmra.mxu0 %vm58_vm0, %v1082_v63  ;;  %v1118_v15 = vld [vmem:[%s1521_s10] ss:$0 sm:$0xff] }
 0x425   :  { %832 = vmatpush.bf16.msrb.mxu1 %v1101_v14  ;;  %vm936_vm0 = vcmask 519168  }
 0x426   :  { %v674_v11 = vmul.f32 %v670_v10, %v666_v21  ;;  %v677_v27 = vpack.c.bf16 %v673_v22, %v673_v22  ;;  %v664_v28 = vpack.c.bf16 %v661_v9, %v663_v24  ;;  %v671_v29 = vunpack.c.l.bf16 %v657_v23 }
 0x428   :  { %v678_v20 = vpack.c.bf16 %v674_v11, %v674_v11  ;;  %v709_v32 = vunpack.c.l.b16 %v677_v27  ;;  %v672_v33 = vunpack.c.l.bf16 %v664_v28  ;;  %v675_v34 = vmul.f32 %v671_v29, %v667_v25 }
 0x429   :  { %833 = vmatpush.bf16.msrb.mxu1 %v1100_v7 }
 0x42a   :  { %v710_v37 = vunpack.c.l.b16 %v678_v20  ;;  %v676_v38 = vmul.f32 %v672_v33, %v668_v12  ;;  %v679_v42 = vpack.c.bf16 %v675_v34, %v675_v34 }
 0x42c   :  { %v713_v40 = vpack.c.b16 %v710_v37, %v709_v32  ;;  %v680_v43 = vpack.c.bf16 %v676_v38, %v676_v38  ;;  %v711_v44 = vunpack.c.l.b16 %v679_v42 }
 0x42d   :  { %834 = vmatpush.bf16.msrb.mxu1 %v1099_v47 }
 0x42e   :  { %741 = vrot.lane.b32.xlu2 %v713_v40, %s1199_s21  ;;  %v719_v45 = vshll.u32 %v713_v40, 16  ;;  %v716_v46 = vshrl.u32 %v713_v40, 16  ;;  %v712_v30 = vunpack.c.l.b16 %v680_v43 }
 0x430   :  { %v733_v48 = vrot.slane %v719_v45, 1  ;;  %v714_v49 = vpack.c.b16 %v712_v30, %v711_v44  ;;  %v718_v50 = vrot.slane %v716_v46, 7 }
 0x431   :  { %835 = vmatpush.bf16.msrb.mxu1 %v1098_v53 }
 0x432   :  { %v734_v31 = vor.u32 %v733_v48, %v716_v46  ;;  %v723_v51 = vshrl.u32 %v714_v49, 16  ;;  %v721_v52 = vor.u32 %v719_v45, %v718_v50  ;;  %v726_v55 = vshll.u32 %v714_v49, 16 }
 0x434   :  { %v739_v54 = vsel %vm1337_vm7, %v734_v31, 0  ;;  %v725_v56 = vrot.slane %v723_v51, 7  ;;  %v735_v60 = vrot.slane %v726_v55, 1  ;;  %v731_v0 = vsel %vm1353_vm10, 0, %v721_v52 }
 0x435   :  { %1061 = vmatmul.msk.bf16.vlgmr.msrb.gmra.mxu3 %vm357_vm11, %v739_v54  ;;  %836 = vmatpush.bf16.msrb.mxu1 %v1097_v58 }
 0x436   :  { %743 = vrot.lane.b32.xlu2 %v714_v49, %s1199_s21  ;;  %v728_v57 = vor.u32 %v726_v55, %v725_v56  ;;  %v736_v61 = vor.u32 %v735_v60, %v723_v51 }
 0x438   :  { %v740_v62 = vsel %vm1337_vm7, %v736_v61, 0  ;;  %v732_v1 = vsel %vm1353_vm10, 0, %v728_v57 }
 0x439   :  { %837 = vmatpush.bf16.msrb.mxu1 %v1096_v59 }
 0x43d   :  { %838 = vmatpush.bf16.msrb.mxu1 %v1095_v36 }
 0x445   :  { %1062 = vmatmul.msk.bf16.gmra.mxu3 %vm357_vm11, %v740_v62 }
 0x488   :  { %v742_v41 = vpop.permute.xlu2 %741 }
 0x489   :  { %v747_v2 = vsel %vm357_vm11, %v731_v0, %v742_v41 }
 0x48a   :  { %839 = vmatmul.bf16.vlgmr.msrb.gmra.mxu1 %v747_v2 }
 0x490   :  { %v744_v3 = vpop.permute.xlu2 %743 }
 0x491   :  { %v751_v4 = vsel %vm357_vm11, %v732_v1, %v744_v3  ;;  %v918_v6 = vpop.f32.mrf.mxu0 }
 0x499   :  { %v920_v10 = vpop.f32.mrf.mxu0 }
 0x49a   :  { %844 = vmatmul.bf16.gmra.mxu1 %v751_v4 }
 0x4a1   :  { %v923_v28 = vpop.f32.mrf.mxu0 }
 0x4a9   :  { %v925_v34 = vpop.f32.mrf.mxu0 }
 0x4b8   :  { %v859_v5 = vpop.f32.mrf.mxu3 }
 0x4c0   :  { %v861_v8 = vpop.f32.mrf.mxu3 }
 0x4c8   :  { %v864_v25 = vpop.f32.mrf.mxu3 }
 0x4d0   :  { %v866_v14 = vpop.f32.mrf.mxu3 }
 0x507   :  { %v840_v16 = vpop.f32.mrf.mxu1 }
 0x508   :  { %v860_v18 = vadd.f32 %v859_v5, %v840_v16 }
 0x50a   :  { %v873_v19 = vadd.f32 %v1118_v15, %v860_v18 }
 0x50c   :  { %v928_v21 = vadd.f32 %v918_v6, %v873_v19 }
 0x50e   :  { %v932_v9 = vpack.c.bf16 %v928_v21, %v928_v21 }
 0x50f   :  { %v842_v22 = vpop.f32.mrf.mxu1 }
 0x510   :  { %937 = vst.msk [vmem:[#allocation2] sm:$0xf] %vm936_vm0, %v932_v9  ;;  %v862_v17 = vadd.f32 %v861_v8, %v842_v22 }
 0x512   :  { %v874_v23 = vadd.f32 %v1118_v15, %v862_v17 }
 0x514   :  { %v929_v24 = vadd.f32 %v920_v10, %v874_v23 }
 0x516   :  { %v933_v26 = vpack.c.bf16 %v929_v24, %v929_v24 }
 0x517   :  { %v845_v11 = vpop.f32.mrf.mxu1 }
 0x518   :  { %938 = vst.msk [vmem:[#allocation2 + $0x4] sm:$0xf] %vm936_vm0, %v933_v26  ;;  %v865_v27 = vadd.f32 %v864_v25, %v845_v11 }
 0x51a   :  { %v875_v29 = vadd.f32 %v1118_v15, %v865_v27 }
 0x51c   :  { %v930_v13 = vadd.f32 %v923_v28, %v875_v29 }
 0x51e   :  { %v934_v12 = vpack.c.bf16 %v930_v13, %v930_v13 }
 0x51f   :  { %v847_v20 = vpop.f32.mrf.mxu1 }
 0x520   :  { %939 = vst.msk [vmem:[#allocation2 + $0x8] sm:$0xf] %vm936_vm0, %v934_v12  ;;  %v867_v32 = vadd.f32 %v866_v14, %v847_v20 }
 0x522   :  { %v876_v33 = vadd.f32 %v1118_v15, %v867_v32 }
 0x524   :  { %v931_v35 = vadd.f32 %v925_v34, %v876_v33 }
 0x526   :  { %v935_v37 = vpack.c.bf16 %v931_v35, %v931_v35 }
 0x528   :  { %940 = vst.msk [vmem:[#allocation2 + $0xc] sm:$0xf] %vm936_vm0, %v935_v37 }
 0x529   :  { %953 = dma.vmem_to_hbm [thread:$0]  %s946_s5, 256, %s948_s7, [#allocation3], %s1199_s21, %s1199_s21, %s1201_s26  }
 0x52a   :  { %1195 = dma.done.wait [#allocation3], 256  }
 0x52b   :  { %1196 = vsyncadd [#allocation3], 4294967040 }
 0x52c   :  { %958 = vsyncpa [#allocation3], 1 }

</bundles_post_ra>
